<compile_context>
chip_gen: v7x
topology: tpu7x:2x2x1
jax: 0.10.0
libtpu: 0.0.40
codegen_flags: <defaults>
</compile_context>

<pallas_src>
import jax
import jax.numpy as jnp
from jax import lax
from jax.experimental import pallas as pl
from jax.experimental.pallas import tpu as pltpu

# ---- small but layout-friendly configuration --------------------------------
B = 2          # batch
S = 64         # tokens per example
C = 256        # channels (LayerNorm / Linear width), multiple of 128
TM = 128       # row tile (multiple of 8); M = B*S = 128 -> grid of 1
LN_EPS = 1e-5  # torch.nn.LayerNorm default


def _gelu_tanh(x):
    # tanh-form GELU: transcendental goes to the EUP (own VLIW slot).
    # TODO(synk): torch.nn.GELU() default is exact erf GELU; this is the tanh
    # approximation (<~1e-3 abs deviation).
    c = 0.7978845608028654  # sqrt(2/pi)
    return 0.5 * x * (1.0 + jnp.tanh(c * (x + 0.044715 * (x * x * x))))


# ------------------------------- the kernel ----------------------------------
def resblock_kernel(x_ref, p_ref, w1_ref, w2_ref, o_ref):
    # p_ref rows: 0=gamma, 1=beta, 2=b1, 3=b2 (rows 4..7 zero padding).
    x = x_ref[...]                                             # (TM, C) f32
    gamma = p_ref[0:1, :]
    beta = p_ref[1:2, :]
    b1 = p_ref[2:3, :]
    b2 = p_ref[3:4, :]

    # pre_norm (LayerNorm over channels), single-pass f32 statistics.
    inv_c = jnp.float32(1.0 / x.shape[-1])
    s1 = jnp.sum(x, axis=-1, keepdims=True)
    s2 = jnp.sum(x * x, axis=-1, keepdims=True)
    mu = s1 * inv_c
    var = s2 * inv_c - mu * mu
    xn = (x - mu) * lax.rsqrt(var + LN_EPS) * gamma + beta

    # proj: Linear -> GELU -> Linear  (bf16 MXU operands, f32 accumulation)
    h = jnp.dot(xn.astype(jnp.bfloat16), w1_ref[...],
                preferred_element_type=jnp.float32) + b1
    h = _gelu_tanh(h)
    y = jnp.dot(h.astype(jnp.bfloat16), w2_ref[...],
                preferred_element_type=jnp.float32) + b2

    # residual: LayerNorm(x) + proj(LayerNorm(x))
    o_ref[...] = (xn + y).astype(o_ref.dtype)


# ------------------------------- wrapper --------------------------------------
def simple_res_block(x, gamma, beta, w1, b1, w2, b2):
    Bb, Ss, Cc = x.shape
    M = Bb * Ss
    assert M % TM == 0 and Cc % 128 == 0 and TM % 8 == 0
    x2 = x.reshape(M, Cc)

    # Pack the four tiny (1, C) affine/bias operands into one (8, C) block.
    params = jnp.concatenate(
        [gamma, beta, b1, b2, jnp.zeros((4, Cc), jnp.float32)], axis=0)

    flops = 2 * (2 * M * Cc * Cc)                 # two (M,C)x(C,C) matmuls
    bytes_accessed = (2 * M * Cc * 4              # x in + out (f32)
                      + 2 * Cc * Cc * 2           # bf16 weights
                      + 8 * Cc * 4)               # packed affine/bias block

    out = pl.pallas_call(
        resblock_kernel,
        out_shape=jax.ShapeDtypeStruct((M, Cc), jnp.float32),
        grid=(M // TM,),
        in_specs=[
            pl.BlockSpec((TM, Cc), lambda i: (i, 0)),   # x row tile (f32)
            pl.BlockSpec((8, Cc), lambda i: (0, 0)),    # packed gamma/beta/b1/b2
            pl.BlockSpec((Cc, Cc), lambda i: (0, 0)),   # W1 (bf16)
            pl.BlockSpec((Cc, Cc), lambda i: (0, 0)),   # W2 (bf16)
        ],
        out_specs=pl.BlockSpec((TM, Cc), lambda i: (i, 0)),
        compiler_params=pltpu.CompilerParams(
            dimension_semantics=("parallel",),
            vmem_limit_bytes=32 * 1024 * 1024,
        ),
        cost_estimate=pl.CostEstimate(
            flops=flops,
            transcendentals=M * Cc,
            bytes_accessed=bytes_accessed),
    )(x2, params, w1, w2)
    return out.reshape(Bb, Ss, Cc)


# --------------------------- deterministic init --------------------------------
def init_params(key):
    k1, k2 = jax.random.split(key)
    gamma = jnp.ones((1, C), jnp.float32)
    beta = jnp.zeros((1, C), jnp.float32)
    w1 = (0.02 * jax.random.normal(k1, (C, C))).astype(jnp.bfloat16)
    b1 = jnp.zeros((1, C), jnp.float32)
    w2 = (0.02 * jax.random.normal(k2, (C, C))).astype(jnp.bfloat16)
    b2 = jnp.zeros((1, C), jnp.float32)
    return gamma, beta, w1, b1, w2, b2


if __name__ == "__main__":
    key = jax.random.PRNGKey(0)
    kx, kp = jax.random.split(key)
    x = jax.random.normal(kx, (B, S, C), dtype=jnp.float32)
    params = init_params(kp)

    out = simple_res_block(x, *params)
    out = jax.block_until_ready(out)

    assert out.shape == (B, S, C), out.shape
    assert bool(jnp.all(jnp.isfinite(out)))
    print("KERNEL_OK")
</pallas_src>

<mosaic_0001>
module attributes {stable_mosaic.version = 11 : i64} {
  func.func @resblock_kernel(%arg0: i32, %arg1: memref<128x256xf32, #tpu.memory_space<vmem>>, %arg2: memref<8x256xf32, #tpu.memory_space<vmem>>, %arg3: memref<256x256xbf16, #tpu.memory_space<vmem>>, %arg4: memref<256x256xbf16, #tpu.memory_space<vmem>>, %arg5: memref<128x256xf32, #tpu.memory_space<vmem>>) attributes {dimension_semantics = [#tpu.dimension_semantics<parallel>], iteration_bounds = array<i64: 1>, scalar_prefetch = 0 : i64, scratch_operands = 0 : i64, tpu.core_type = #tpu.core_type<tc>, window_params = [{transform_indices = @transform_0, window_bounds = array<i64: 128, 256>}, {pipeline_mode = #tpu.pipeline_mode<synchronous>, transform_indices = @transform_1, window_bounds = array<i64: 8, 256>}, {pipeline_mode = #tpu.pipeline_mode<synchronous>, transform_indices = @transform_2, window_bounds = array<i64: 256, 256>}, {pipeline_mode = #tpu.pipeline_mode<synchronous>, transform_indices = @transform_3, window_bounds = array<i64: 256, 256>}, {transform_indices = @transform_4, window_bounds = array<i64: 128, 256>}]} {
    %c0 = arith.constant 0 : index
    %c0_0 = arith.constant 0 : index
    %0 = vector.load %arg1[%c0, %c0_0] : memref<128x256xf32, #tpu.memory_space<vmem>>, vector<128x256xf32>
    %c0_1 = arith.constant 0 : index
    %c0_2 = arith.constant 0 : index
    %1 = vector.load %arg2[%c0_1, %c0_2] : memref<8x256xf32, #tpu.memory_space<vmem>>, vector<1x256xf32>
    %c1 = arith.constant 1 : index
    %c0_3 = arith.constant 0 : index
    %2 = vector.load %arg2[%c1, %c0_3] : memref<8x256xf32, #tpu.memory_space<vmem>>, vector<1x256xf32>
    %c2 = arith.constant 2 : index
    %c0_4 = arith.constant 0 : index
    %3 = vector.load %arg2[%c2, %c0_4] : memref<8x256xf32, #tpu.memory_space<vmem>>, vector<1x256xf32>
    %c3 = arith.constant 3 : index
    %c0_5 = arith.constant 0 : index
    %4 = vector.load %arg2[%c3, %c0_5] : memref<8x256xf32, #tpu.memory_space<vmem>>, vector<1x256xf32>
    %cst = arith.constant dense<0.000000e+00> : vector<128xf32>
    %5 = vector.multi_reduction <add>, %0, %cst [1] : vector<128x256xf32> to vector<128xf32>
    %6 = vector.shape_cast %5 : vector<128xf32> to vector<128x1xf32>
    %7 = arith.mulf %0, %0 : vector<128x256xf32>
    %cst_6 = arith.constant dense<0.000000e+00> : vector<128xf32>
    %8 = vector.multi_reduction <add>, %7, %cst_6 [1] : vector<128x256xf32> to vector<128xf32>
    %9 = vector.shape_cast %8 : vector<128xf32> to vector<128x1xf32>
    %cst_7 = arith.constant 3.906250e-03 : f32
    %10 = vector.broadcast %cst_7 : f32 to vector<128x1xf32>
    %11 = arith.mulf %6, %10 : vector<128x1xf32>
    %cst_8 = arith.constant 3.906250e-03 : f32
    %12 = vector.broadcast %cst_8 : f32 to vector<128x1xf32>
    %13 = arith.mulf %9, %12 : vector<128x1xf32>
    %14 = arith.mulf %11, %11 : vector<128x1xf32>
    %15 = arith.subf %13, %14 : vector<128x1xf32>
    %16 = vector.broadcast %11 : vector<128x1xf32> to vector<128x256xf32>
    %17 = arith.subf %0, %16 : vector<128x256xf32>
    %cst_9 = arith.constant 9.99999974E-6 : f32
    %18 = vector.broadcast %cst_9 : f32 to vector<128x1xf32>
    %19 = arith.addf %15, %18 : vector<128x1xf32>
    %20 = math.rsqrt %19 : vector<128x1xf32>
    %21 = vector.broadcast %20 : vector<128x1xf32> to vector<128x256xf32>
    %22 = arith.mulf %17, %21 : vector<128x256xf32>
    %23 = vector.broadcast %1 : vector<1x256xf32> to vector<128x256xf32>
    %24 = arith.mulf %22, %23 : vector<128x256xf32>
    %25 = vector.broadcast %2 : vector<1x256xf32> to vector<128x256xf32>
    %26 = arith.addf %24, %25 : vector<128x256xf32>
    %27 = arith.truncf %26 : vector<128x256xf32> to vector<128x256xbf16>
    %c0_10 = arith.constant 0 : index
    %c0_11 = arith.constant 0 : index
    %28 = vector.load %arg3[%c0_10, %c0_11] : memref<256x256xbf16, #tpu.memory_space<vmem>>, vector<256x256xbf16>
    %cst_12 = arith.constant dense<0.000000e+00> : vector<128x256xf32>
    %29 = tpu.matmul %27, %28, %cst_12 {dimension_numbers = #tpu.dot_dimension_numbers<[1], [0], [0], [1], [0, 0, 1, 1], [], []>} : vector<128x256xbf16>, vector<256x256xbf16>, vector<128x256xf32> -> vector<128x256xf32>
    %30 = vector.broadcast %3 : vector<1x256xf32> to vector<128x256xf32>
    %31 = arith.addf %29, %30 : vector<128x256xf32>
    %cst_13 = arith.constant 5.000000e-01 : f32
    %32 = vector.broadcast %cst_13 : f32 to vector<128x256xf32>
    %33 = arith.mulf %32, %31 : vector<128x256xf32>
    %34 = arith.mulf %31, %31 : vector<128x256xf32>
    %35 = arith.mulf %34, %31 : vector<128x256xf32>
    %cst_14 = arith.constant 4.471500e-02 : f32
    %36 = vector.broadcast %cst_14 : f32 to vector<128x256xf32>
    %37 = arith.mulf %36, %35 : vector<128x256xf32>
    %38 = arith.addf %31, %37 : vector<128x256xf32>
    %cst_15 = arith.constant 0.797884583 : f32
    %39 = vector.broadcast %cst_15 : f32 to vector<128x256xf32>
    %40 = arith.mulf %39, %38 : vector<128x256xf32>
    %41 = math.tanh %40 : vector<128x256xf32>
    %cst_16 = arith.constant 1.000000e+00 : f32
    %42 = vector.broadcast %cst_16 : f32 to vector<128x256xf32>
    %43 = arith.addf %42, %41 : vector<128x256xf32>
    %44 = arith.mulf %33, %43 : vector<128x256xf32>
    %45 = arith.truncf %44 : vector<128x256xf32> to vector<128x256xbf16>
    %c0_17 = arith.constant 0 : index
    %c0_18 = arith.constant 0 : index
    %46 = vector.load %arg4[%c0_17, %c0_18] : memref<256x256xbf16, #tpu.memory_space<vmem>>, vector<256x256xbf16>
    %cst_19 = arith.constant dense<0.000000e+00> : vector<128x256xf32>
    %47 = tpu.matmul %45, %46, %cst_19 {dimension_numbers = #tpu.dot_dimension_numbers<[1], [0], [0], [1], [0, 0, 1, 1], [], []>} : vector<128x256xbf16>, vector<256x256xbf16>, vector<128x256xf32> -> vector<128x256xf32>
    %48 = vector.broadcast %4 : vector<1x256xf32> to vector<128x256xf32>
    %49 = arith.addf %47, %48 : vector<128x256xf32>
    %50 = arith.addf %26, %49 : vector<128x256xf32>
    %c0_20 = arith.constant 0 : index
    %c0_21 = arith.constant 0 : index
    %51 = vector.load %arg5[%c0_20, %c0_21] : memref<128x256xf32, #tpu.memory_space<vmem>>, vector<128x256xf32>
    tpu.vector_store %arg5[%c0_20, %c0_21], %50 {strides = array<i32>} : memref<128x256xf32, #tpu.memory_space<vmem>>, vector<128x256xf32>,
    return
  }
  func.func @transform_0(%arg0: i32) -> (i32, i32) {
    %c0_i32 = arith.constant 0 : i32
    %c0_i32_0 = arith.constant 0 : i32
    return %arg0, %c0_i32 : i32, i32
  }
  func.func @transform_1(%arg0: i32) -> (i32, i32) {
    %c0_i32 = arith.constant 0 : i32
    %c0_i32_0 = arith.constant 0 : i32
    %c0_i32_1 = arith.constant 0 : i32
    return %c0_i32, %c0_i32_0 : i32, i32
  }
  func.func @transform_2(%arg0: i32) -> (i32, i32) {
    %c0_i32 = arith.constant 0 : i32
    %c0_i32_0 = arith.constant 0 : i32
    %c0_i32_1 = arith.constant 0 : i32
    return %c0_i32, %c0_i32_0 : i32, i32
  }
  func.func @transform_3(%arg0: i32) -> (i32, i32) {
    %c0_i32 = arith.constant 0 : i32
    %c0_i32_0 = arith.constant 0 : i32
    %c0_i32_1 = arith.constant 0 : i32
    return %c0_i32, %c0_i32_0 : i32, i32
  }
  func.func @transform_4(%arg0: i32) -> (i32, i32) {
    %c0_i32 = arith.constant 0 : i32
    %c0_i32_0 = arith.constant 0 : i32
    return %arg0, %c0_i32 : i32, i32
  }
}

</mosaic_0001>

<bundles_post_ra>
// kernel: tpu_custom_call.1
= control target key start
LH: loop header
LB: loop body
LE: loop exit
PB: predicated region body
PF: predicated region fallthrough
CT: control target
= control target key end

     0   :  { %9 = vsyncpa [#allocation3], 0  ;;  %s2799_s0 = inlined_call_operand.hbm [shape: f32[128,256], index: 0, kind: input, shape index: {}]   ;;  %s2800_s1 = inlined_call_operand.hbm [shape: f32[8,256], index: 1, kind: input, shape index: {}]   ;;  %s2801_s2 = inlined_call_operand.hbm [shape: bf16[256,256], index: 2, kind: input, shape index: {}]   ;;  %s2802_s3 = inlined_call_operand.hbm [shape: bf16[256,256], index: 3, kind: input, shape index: {}]   ;;  %s2803_s4 = inlined_call_operand.hbm [shape: f32[128,256], index: 4, kind: output, shape index: {}]  }
   0x1   :  { %10 = vsyncpa [#allocation6], 0 }
   0x2   :  { %11 = vsyncpa [#allocation9], 0 }
   0x3   :  { %12 = vsyncpa [#allocation4], 0  ;;  %s1902_s15 = smov [#allocation5]   ;;  %s1903_s17 = smov [#allocation2]  }
   0x4   :  { %s31_s16 = sshll.u32 %s1902_s15, 4  ;;  %s18_s18 = sshll.u32 %s1903_s17, 4  ;;  %s32_s16 = int_to_ptr.vmem [resolvable:$true] %s31_s16  ;;  %s1936_s18 = int_to_ptr.vmem [resolvable:$true] %s18_s18 }
   0x5   :  { %s1784_s21 = scalar_lea.hbm %s2800_s1, 256 }
   0x6   :  { %p1785_p0 = scmp.ne.s32.totalorder %s2800_s1, %s1784_s21  ;;  %p1788_p1 = scmp.lt.u32.totalorder %s1784_s21, %s2800_s1 }
   0x8   :  { %p1790_p2 = pnand %p1788_p1, %p1785_p0 }
   0xa   :  { %1793 = shalt.err (!%p1790_p2)
}
   0xb   :  { %s1794_s26 = scalar_lea.vmem %s32_s16, 256  ;;  %p1799_p4 = scmp.lt.s32.totalorder %s32_s16, %s32_s16 }
   0xc   :  { %p1795_p3 = scmp.ne.s32.totalorder %s32_s16, %s1794_s26  ;;  %p1800_p5 = scmp.lt.s32.totalorder %s1794_s26, %s1794_s26 }
   0xe   :  { %p1801_p6 = por %p1800_p5, %p1799_p4 }
  0x10   :  { %p1802_p7 = pnand %p1801_p6, %p1795_p3 }
  0x12   :  { %1805 = shalt.err (!%p1802_p7)
}
  0x13   :  { %34 = dma.hbm_to_vmem [thread:$0]  %s2800_s1, 256, %s32_s16, [#allocation6]  }
  0x14   :  { %s1806_s5 = scalar_lea.hbm %s2799_s0, 4096 }
  0x15   :  { %p1807_p8 = scmp.ne.s32.totalorder %s2799_s0, %s1806_s5  ;;  %p1810_p9 = scmp.lt.u32.totalorder %s1806_s5, %s2799_s0 }
  0x17   :  { %p1812_p10 = pnand %p1810_p9, %p1807_p8 }
  0x19   :  { %1815 = shalt.err (!%p1812_p10)
}
  0x1a   :  { %s1816_s10 = scalar_lea.vmem %s1936_s18, 4096  ;;  %p1821_p12 = scmp.lt.s32.totalorder %s1936_s18, %s1936_s18 }
  0x1b   :  { %p1817_p11 = scmp.ne.s32.totalorder %s1936_s18, %s1816_s10  ;;  %p1822_p13 = scmp.lt.s32.totalorder %s1816_s10, %s1816_s10 }
  0x1d   :  { %p1823_p0 = por %p1822_p13, %p1821_p12 }
  0x1f   :  { %p1824_p1 = pnand %p1823_p0, %p1817_p11 }
  0x21   :  { %1827 = shalt.err (!%p1824_p1)
}
  0x22   :  { %s1904_s1 = smov 256   ;;  %s1905_s11 = smov 16  }
  0x23   :  { %24 = dma.hbm_to_vmem [thread:$0]  %s2799_s0, 4096, %s1936_s18, [#allocation3], %s1904_s1, %s1904_s1, %s1905_s11  }
  0x24   :  { %s1906_s14 = smov [#allocation7]   ;;  %s1828_s19 = scalar_lea.hbm %s2801_s2, 4096 }
  0x25   :  { %s40_s15 = sshll.u32 %s1906_s14, 4  ;;  %p1829_p2 = scmp.ne.s32.totalorder %s2801_s2, %s1828_s19  ;;  %s41_s15 = int_to_ptr.vmem [resolvable:$true] %s40_s15 }
  0x26   :  { %p1832_p3 = scmp.lt.u32.totalorder %s1828_s19, %s2801_s2 }
  0x28   :  { %p1834_p4 = pnand %p1832_p3, %p1829_p2 }
  0x2a   :  { %1837 = shalt.err (!%p1834_p4)
}
  0x2b   :  { %s1838_s24 = scalar_lea.vmem %s41_s15, 4096  ;;  %p1843_p6 = scmp.lt.s32.totalorder %s41_s15, %s41_s15 }
  0x2c   :  { %p1839_p5 = scmp.ne.s32.totalorder %s41_s15, %s1838_s24  ;;  %p1844_p7 = scmp.lt.s32.totalorder %s1838_s24, %s1838_s24 }
  0x2e   :  { %p1845_p8 = por %p1844_p7, %p1843_p6 }
  0x30   :  { %p1846_p9 = pnand %p1845_p8, %p1839_p5 }
  0x32   :  { %1849 = shalt.err (!%p1846_p9)
}
  0x33   :  { %s1907_s0 = smov 128   ;;  %s1908_s18 = smov 8  }
  0x34   :  { %46 = dma.hbm_to_vmem [thread:$0]  %s2801_s2, 4096, %s41_s15, [#allocation6], %s1907_s0, %s1907_s0, %s1908_s18  }
  0x35   :  { %s1909_s27 = smov [#allocation8]   ;;  %s1850_s5 = scalar_lea.hbm %s2802_s3, 4096 }
  0x36   :  { %s52_s28 = sshll.u32 %s1909_s27, 4  ;;  %p1851_p10 = scmp.ne.s32.totalorder %s2802_s3, %s1850_s5  ;;  %s53_s28 = int_to_ptr.vmem [resolvable:$true] %s52_s28 }
  0x37   :  { %p1854_p11 = scmp.lt.u32.totalorder %s1850_s5, %s2802_s3 }
  0x39   :  { %p1856_p12 = pnand %p1854_p11, %p1851_p10 }
  0x3b   :  { %1859 = shalt.err (!%p1856_p12)
}
  0x3c   :  { %s1860_s10 = scalar_lea.vmem %s53_s28, 4096  ;;  %p1865_p0 = scmp.lt.s32.totalorder %s53_s28, %s53_s28 }
  0x3d   :  { %p1861_p13 = scmp.ne.s32.totalorder %s53_s28, %s1860_s10  ;;  %p1866_p1 = scmp.lt.s32.totalorder %s1860_s10, %s1860_s10 }
  0x3f   :  { %p1867_p2 = por %p1866_p1, %p1865_p0 }
  0x41   :  { %p1868_p3 = pnand %p1867_p2, %p1861_p13 }
  0x43   :  { %1871 = shalt.err (!%p1868_p3)
}
  0x44   :  { %58 = dma.hbm_to_vmem [thread:$0]  %s2802_s3, 4096, %s53_s28, [#allocation9], %s1907_s0, %s1907_s0, %s1908_s18  }
  0x45   :  { %1894 = dma.done.wait [#allocation3], 4096  }
  0x46   :  { %1895 = vsyncadd [#allocation3], 4294963200 }
  0x47   :  { %1896 = dma.done.wait [#allocation6], 4352  }
  0x48   :  { %1897 = vsyncadd [#allocation6], 4294962944 }
  0x49   :  { %1898 = dma.done.wait [#allocation9], 4096  }
  0x4a   :  { %1899 = vsyncadd [#allocation9], 4294963200  ;;  %v1994_v0 = vld [vmem:[#allocation2] sm:$0xff]  ;;  %v1996_v1 = vld [vmem:[#allocation2 + $0x8] sm:$0xff]  ;;  %s1910_s3 = smov [#allocation10]  }
  0x4b   :  { %v1998_v2 = vld [vmem:[#allocation2 + $0x10] sm:$0xff]  ;;  %v110_v3 = vadd.f32 %v1996_v1, %v1994_v0  ;;  %v158_v4 = vmul.f32 %v1994_v0, %v1994_v0  ;;  %v159_v5 = vmul.f32 %v1996_v1, %v1996_v1  ;;  %v2006_v6 = vld [vmem:[#allocation2 + $0x18] sm:$0xff]  ;;  %v2014_v11 = vld [vmem:[#allocation2 + $0x20] sm:$0xff]  ;;  %s1505_s13 = sshll.u32 %s1910_s3, 4  ;;  %s1506_s13 = int_to_ptr.vmem [resolvable:$true] %s1505_s13 }
  0x4c   :  { %v160_v7 = vmul.f32 %v1998_v2, %v1998_v2  ;;  %v161_v8 = vmul.f32 %v2006_v6, %v2006_v6  ;;  %v113_v10 = vadd.f32 %v2006_v6, %v1998_v2  ;;  %v2016_v12 = vld [vmem:[#allocation2 + $0x28] sm:$0xff]  ;;  %v2018_v14 = vld [vmem:[#allocation2 + $0x30] sm:$0xff]  ;;  %v2020_v15 = vld [vmem:[#allocation2 + $0x38] sm:$0xff]  ;;  %v162_v17 = vmul.f32 %v2014_v11, %v2014_v11  ;;  %s1872_s14 = scalar_lea.vmem %s1506_s13, 4096  ;;  %p1877_p5 = scmp.lt.s32.totalorder %s1506_s13, %s1506_s13 }
  0x4d   :  { %111 = vadd.xlane.f32.xlu0 %v110_v3  ;;  %v190_v9 = vadd.f32 %v159_v5, %v158_v4  ;;  %v116_v16 = vadd.f32 %v2016_v12, %v2014_v11  ;;  %v163_v18 = vmul.f32 %v2016_v12, %v2016_v12  ;;  %v119_v19 = vadd.f32 %v2020_v15, %v2018_v14  ;;  %v2034_v22 = vld [vmem:[#allocation2 + $0x40] sm:$0xff]  ;;  %v2036_v24 = vld [vmem:[#allocation2 + $0x48] sm:$0xff]  ;;  %v1592_v25 = vld [vmem:[#allocation7 + $0x4] ss:$8 sps:$4 sm:$0xff]   ;;  %p1873_p4 = scmp.ne.s32.totalorder %s1506_s13, %s1872_s14  ;;  %p1878_p6 = scmp.lt.s32.totalorder %s1872_s14, %s1872_s14 }
  0x4e   :  { %v193_v13 = vadd.f32 %v161_v8, %v160_v7  ;;  %v164_v20 = vmul.f32 %v2018_v14, %v2018_v14  ;;  %v165_v21 = vmul.f32 %v2020_v15, %v2020_v15  ;;  %v1594_v26 = vld [vmem:[#allocation7] ss:$8 sps:$4 sm:$0xff]   ;;  %v1595_v28 = vld [vmem:[#allocation7 + $0x14] ss:$8 sps:$4 sm:$0xff]   ;;  %703 = vmatprep.subr.bf16.mxu0 %v1592_v25  ;;  %v122_v31 = vadd.f32 %v2036_v24, %v2034_v22  ;;  %v1597_v34 = vld [vmem:[#allocation7 + $0x10] ss:$8 sps:$4 sm:$0xff]  }
  0x4f   :  { %191 = vadd.xlane.f32.xlu1 %v190_v9  ;;  %v196_v23 = vadd.f32 %v163_v18, %v162_v17  ;;  %v2038_v29 = vld [vmem:[#allocation2 + $0x50] sm:$0xff]  ;;  %v2040_v30 = vld [vmem:[#allocation2 + $0x58] sm:$0xff]  ;;  %v166_v32 = vmul.f32 %v2034_v22, %v2034_v22  ;;  %v167_v33 = vmul.f32 %v2036_v24, %v2036_v24  ;;  %704 = vmatpush1.bf16.msra.mxu0 %v1594_v26  ;;  %v2054_v40 = vld [vmem:[#allocation2 + $0x60] sm:$0xff]  ;;  %p1879_p7 = por %p1878_p6, %p1877_p5 }
  0x50   :  { %v199_v27 = vadd.f32 %v165_v21, %v164_v20  ;;  %v125_v35 = vadd.f32 %v2040_v30, %v2038_v29  ;;  %v168_v36 = vmul.f32 %v2038_v29, %v2038_v29  ;;  %v169_v37 = vmul.f32 %v2040_v30, %v2040_v30  ;;  %705 = vmatprep.subr.bf16.mxu0 %v1595_v28  ;;  %v1598_v38 = vld [vmem:[#allocation7 + $0x24] ss:$8 sps:$4 sm:$0xff]   ;;  %v2056_v41 = vld [vmem:[#allocation2 + $0x68] sm:$0xff]  ;;  %v1600_v42 = vld [vmem:[#allocation7 + $0x20] ss:$8 sps:$4 sm:$0xff]  }
  0x51   :  { %114 = vadd.xlane.f32.xlu0 %v113_v10  ;;  %v202_v39 = vadd.f32 %v167_v33, %v166_v32  ;;  %v1601_v44 = vld [vmem:[#allocation7 + $0x34] ss:$8 sps:$4 sm:$0xff]   ;;  %v2058_v45 = vld [vmem:[#allocation2 + $0x70] sm:$0xff]  ;;  %v2060_v46 = vld [vmem:[#allocation2 + $0x78] sm:$0xff]  ;;  %v128_v47 = vadd.f32 %v2056_v41, %v2054_v40  ;;  %v170_v48 = vmul.f32 %v2054_v40, %v2054_v40  ;;  %v171_v49 = vmul.f32 %v2056_v41, %v2056_v41  ;;  %p1880_p8 = pnand %p1879_p7, %p1873_p4 }
  0x52   :  { %v205_v43 = vadd.f32 %v169_v37, %v168_v36  ;;  %v1603_v50 = vld [vmem:[#allocation7 + $0x30] ss:$8 sps:$4 sm:$0xff]   ;;  %v131_v51 = vadd.f32 %v2060_v46, %v2058_v45  ;;  %v172_v52 = vmul.f32 %v2058_v45, %v2058_v45  ;;  %v173_v53 = vmul.f32 %v2060_v46, %v2060_v46  ;;  %v1604_v54 = vld [vmem:[#allocation7 + $0x44] ss:$8 sps:$4 sm:$0xff]   ;;  %v1606_v60 = vld [vmem:[#allocation7 + $0x40] ss:$8 sps:$4 sm:$0xff]  }
  0x53   :  { %194 = vadd.xlane.f32.xlu1 %v193_v13  ;;  %706 = vmatpush1.bf16.msra.mxu0 %v1597_v34  ;;  %v2074_v55 = vld [vmem:[#allocation2 + $0x80] sm:$0xff]  ;;  %v2076_v56 = vld [vmem:[#allocation2 + $0x88] sm:$0xff]  ;;  %v208_v57 = vadd.f32 %v171_v49, %v170_v48  ;;  %v2078_v58 = vld [vmem:[#allocation2 + $0x90] sm:$0xff] }
  0x54   :  { %707 = vmatprep.subr.bf16.mxu0 %v1598_v38  ;;  %v2080_v59 = vld [vmem:[#allocation2 + $0x98] sm:$0xff]  ;;  %v211_v61 = vadd.f32 %v173_v53, %v172_v52  ;;  %v1607_v62 = vld [vmem:[#allocation7 + $0x54] ss:$8 sps:$4 sm:$0xff]   ;;  %v134_v63 = vadd.f32 %v2076_v56, %v2074_v55  ;;  %v174_v3 = vmul.f32 %v2074_v55, %v2074_v55  ;;  %v175_v4 = vmul.f32 %v2076_v56, %v2076_v56  ;;  %v1609_v5 = vld [vmem:[#allocation7 + $0x50] ss:$8 sps:$4 sm:$0xff]  }
  0x55   :  { %117 = vadd.xlane.f32.xlu0 %v116_v16  ;;  %v137_v7 = vadd.f32 %v2080_v59, %v2078_v58  ;;  %v176_v8 = vmul.f32 %v2078_v58, %v2078_v58  ;;  %v177_v9 = vmul.f32 %v2080_v59, %v2080_v59  ;;  %v1610_v10 = vld [vmem:[#allocation7 + $0x64] ss:$8 sps:$4 sm:$0xff]   ;;  %v2094_v13 = vld [vmem:[#allocation2 + $0xa0] sm:$0xff]  ;;  %v2096_v16 = vld [vmem:[#allocation2 + $0xa8] sm:$0xff] }
  0x56   :  { %v214_v17 = vadd.f32 %v175_v4, %v174_v3  ;;  %v2098_v18 = vld [vmem:[#allocation2 + $0xb0] sm:$0xff]  ;;  %v1613_v21 = vld [vmem:[#allocation7 + $0x74] ss:$8 sps:$4 sm:$0xff]   ;;  %v140_v25 = vadd.f32 %v2096_v16, %v2094_v13  ;;  %v178_v26 = vmul.f32 %v2094_v13, %v2094_v13  ;;  %v1615_v28 = vld [vmem:[#allocation7 + $0x70] ss:$8 sps:$4 sm:$0xff]  }
  0x57   :  { %120 = vadd.xlane.f32.xlu1 %v119_v19  ;;  %708 = vmatpush1.bf16.msra.mxu0 %v1600_v42  ;;  %v1612_v19 = vld [vmem:[#allocation7 + $0x60] ss:$8 sps:$4 sm:$0xff]   ;;  %v217_v20 = vadd.f32 %v177_v9, %v176_v8  ;;  %v180_v32 = vmul.f32 %v2098_v18, %v2098_v18  ;;  %v1616_v34 = vld [vmem:[#allocation7 + $0x84] ss:$8 sps:$4 sm:$0xff]   ;;  %v2114_v36 = vld [vmem:[#allocation2 + $0xc0] sm:$0xff] }
  0x58   :  { %709 = vmatprep.subr.bf16.mxu0 %v1601_v44  ;;  %v2116_v37 = vld [vmem:[#allocation2 + $0xc8] sm:$0xff]  ;;  %v1618_v38 = vld [vmem:[#allocation7 + $0x80] ss:$8 sps:$4 sm:$0xff]   ;;  %v182_v48 = vmul.f32 %v2114_v36, %v2114_v36 }
  0x59   :  { %197 = vadd.xlane.f32.xlu0 %v196_v23  ;;  %v2100_v23 = vld [vmem:[#allocation2 + $0xb8] sm:$0xff]  ;;  %v1619_v42 = vld [vmem:[#allocation7 + $0x94] ss:$8 sps:$4 sm:$0xff]   ;;  %v183_v49 = vmul.f32 %v2116_v37, %v2116_v37  ;;  %v2138_v4 = vld [vmem:[#allocation2 + $0xf0] sm:$0xff] }
  0x5a   :  { %v181_v33 = vmul.f32 %v2100_v23, %v2100_v23  ;;  %v2120_v44 = vld [vmem:[#allocation2 + $0xd8] sm:$0xff]  ;;  %v1625_v3 = vld [vmem:[#allocation7 + $0xb4] ss:$8 sps:$4 sm:$0xff]  }
  0x5b   :  { %200 = vadd.xlane.f32.xlu1 %v199_v27  ;;  %710 = vmatpush1.bf16.msra.mxu0 %v1603_v50  ;;  %v179_v27 = vmul.f32 %v2096_v16, %v2096_v16  ;;  %v1621_v50 = vld [vmem:[#allocation7 + $0x90] ss:$8 sps:$4 sm:$0xff]   ;;  %v185_v53 = vmul.f32 %v2120_v44, %v2120_v44 }
  0x5c   :  { %711 = vmatprep.subr.bf16.mxu0 %v1604_v54  ;;  %v1622_v54 = vld [vmem:[#allocation7 + $0xa4] ss:$8 sps:$4 sm:$0xff]  }
  0x5d   :  { %123 = vadd.xlane.f32.xlu0 %v122_v31  ;;  %v143_v31 = vadd.f32 %v2100_v23, %v2098_v18 }
  0x5f   :  { %126 = vadd.xlane.f32.xlu1 %v125_v35  ;;  %712 = vmatpush1.bf16.msra.mxu0 %v1606_v60  ;;  %v220_v35 = vadd.f32 %v179_v27, %v178_v26  ;;  %v2134_v60 = vld [vmem:[#allocation2 + $0xe0] sm:$0xff]  ;;  %v1630_v26 = vld [vmem:[#allocation7 + $0xc0] ss:$8 sps:$4 sm:$0xff]  }
  0x60   :  { %713 = vmatprep.subr.bf16.mxu0 %v1607_v62  ;;  %v1624_v62 = vld [vmem:[#allocation7 + $0xa0] ss:$8 sps:$4 sm:$0xff]   ;;  %v186_v8 = vmul.f32 %v2134_v60, %v2134_v60 }
  0x61   :  { %203 = vadd.xlane.f32.xlu0 %v202_v39  ;;  %v223_v39 = vadd.f32 %v181_v33, %v180_v32  ;;  %v1634_v32 = vld [vmem:[#allocation7 + $0xe4] ss:$8 sps:$4 sm:$0xff]   ;;  %v1636_v33 = vld [vmem:[#allocation7 + $0xe0] ss:$8 sps:$4 sm:$0xff]  }
  0x63   :  { %206 = vadd.xlane.f32.xlu1 %v205_v43  ;;  %714 = vmatpush1.bf16.msra.mxu0 %v1609_v5  ;;  %v2118_v43 = vld [vmem:[#allocation2 + $0xd0] sm:$0xff]  ;;  %v2140_v5 = vld [vmem:[#allocation2 + $0xf8] sm:$0xff] }
  0x64   :  { %715 = vmatprep.subr.bf16.mxu0 %v1610_v10  ;;  %v184_v52 = vmul.f32 %v2118_v43, %v2118_v43  ;;  %v1627_v10 = vld [vmem:[#allocation7 + $0xb0] ss:$8 sps:$4 sm:$0xff]  }
  0x65   :  { %129 = vadd.xlane.f32.xlu0 %v128_v47  ;;  %v146_v47 = vadd.f32 %v2116_v37, %v2114_v36 }
  0x67   :  { %132 = vadd.xlane.f32.xlu1 %v131_v51  ;;  %716 = vmatpush1.bf16.msra.mxu0 %v1612_v19  ;;  %v149_v51 = vadd.f32 %v2120_v44, %v2118_v43  ;;  %v188_v19 = vmul.f32 %v2138_v4, %v2138_v4 }
  0x68   :  { %717 = vmatprep.subr.bf16.mxu0 %v1613_v21  ;;  %v1628_v21 = vld [vmem:[#allocation7 + $0xc4] ss:$8 sps:$4 sm:$0xff]  }
  0x69   :  { %209 = vadd.xlane.f32.xlu0 %v208_v57  ;;  %v226_v57 = vadd.f32 %v183_v49, %v182_v48  ;;  %v1646_v48 = vld [vmem:[#allocation8 + $0x24] ss:$8 sps:$4 sm:$0xff]   ;;  %v1648_v49 = vld [vmem:[#allocation8 + $0x20] ss:$8 sps:$4 sm:$0xff]  }
  0x6b   :  { %212 = vadd.xlane.f32.xlu1 %v211_v61  ;;  %718 = vmatpush1.bf16.msra.mxu0 %v1615_v28  ;;  %v2136_v61 = vld [vmem:[#allocation2 + $0xe8] sm:$0xff] }
  0x6c   :  { %719 = vmatprep.subr.bf16.mxu0 %v1616_v34  ;;  %v187_v9 = vmul.f32 %v2136_v61, %v2136_v61  ;;  %v1631_v28 = vld [vmem:[#allocation7 + $0xd4] ss:$8 sps:$4 sm:$0xff]  }
  0x6d   :  { %135 = vadd.xlane.f32.xlu0 %v134_v63  ;;  %v229_v63 = vadd.f32 %v185_v53, %v184_v52  ;;  %v1637_v34 = vld [vmem:[#allocation7 + $0xf4] ss:$8 sps:$4 sm:$0xff]   ;;  %v1652_v52 = vld [vmem:[#allocation8 + $0x44] ss:$8 sps:$4 sm:$0xff]   ;;  %v1654_v53 = vld [vmem:[#allocation8 + $0x40] ss:$8 sps:$4 sm:$0xff]  }
  0x6f   :  { %138 = vadd.xlane.f32.xlu1 %v137_v7  ;;  %720 = vmatpush1.bf16.msra.mxu0 %v1618_v38  ;;  %v152_v7 = vadd.f32 %v2136_v61, %v2134_v60  ;;  %v1640_v38 = vld [vmem:[#allocation8 + $0x4] ss:$8 sps:$4 sm:$0xff]  }
  0x70   :  { %721 = vmatprep.subr.bf16.mxu0 %v1619_v42  ;;  %v1643_v42 = vld [vmem:[#allocation8 + $0x14] ss:$8 sps:$4 sm:$0xff]   ;;  %1323 = vmatprep.subr.bf16.mxu1 %v1640_v38  ;;  %v399_v38 = vlaneseq }
  0x71   :  { %215 = vadd.xlane.f32.xlu0 %v214_v17  ;;  %v155_v17 = vadd.f32 %v2140_v5, %v2138_v4 }
  0x73   :  { %218 = vadd.xlane.f32.xlu1 %v217_v20  ;;  %722 = vmatpush1.bf16.msra.mxu0 %v1621_v50  ;;  %v189_v20 = vmul.f32 %v2140_v5, %v2140_v5  ;;  %v1649_v50 = vld [vmem:[#allocation8 + $0x34] ss:$8 sps:$4 sm:$0xff]  }
  0x74   :  { %723 = vmatprep.subr.bf16.mxu0 %v1622_v54  ;;  %v1655_v54 = vld [vmem:[#allocation8 + $0x54] ss:$8 sps:$4 sm:$0xff]  }
  0x75   :  { %141 = vadd.xlane.f32.xlu0 %v140_v25  ;;  %v232_v25 = vadd.f32 %v187_v9, %v186_v8  ;;  %v235_v27 = vadd.f32 %v189_v20, %v188_v19 }
  0x77   :  { %144 = vadd.xlane.f32.xlu1 %v143_v31  ;;  %724 = vmatpush1.bf16.msra.mxu0 %v1624_v62  ;;  %v1633_v31 = vld [vmem:[#allocation7 + $0xd0] ss:$8 sps:$4 sm:$0xff]   ;;  %v1658_v62 = vld [vmem:[#allocation8 + $0x64] ss:$8 sps:$4 sm:$0xff]  }
  0x78   :  { %725 = vmatprep.subr.bf16.mxu0 %v1625_v3  ;;  %v1661_v3 = vld [vmem:[#allocation8 + $0x74] ss:$8 sps:$4 sm:$0xff]  }
  0x79   :  { %221 = vadd.xlane.f32.xlu0 %v220_v35  ;;  %v1639_v35 = vld [vmem:[#allocation7 + $0xf0] ss:$8 sps:$4 sm:$0xff]  }
  0x7b   :  { %224 = vadd.xlane.f32.xlu1 %v223_v39  ;;  %726 = vmatpush1.bf16.msra.mxu0 %v1627_v10  ;;  %v1642_v39 = vld [vmem:[#allocation8] ss:$8 sps:$4 sm:$0xff]  }
  0x7c   :  { %727 = vmatprep.subr.bf16.mxu0 %v1628_v21  ;;  %1324 = vmatpush1.bf16.msra.mxu1 %v1642_v39 }
  0x7d   :  { %147 = vadd.xlane.f32.xlu0 %v146_v47  ;;  %v1645_v47 = vld [vmem:[#allocation8 + $0x10] ss:$8 sps:$4 sm:$0xff]   ;;  %1325 = vmatprep.subr.bf16.mxu1 %v1643_v42 }
  0x7f   :  { %150 = vadd.xlane.f32.xlu1 %v149_v51  ;;  %728 = vmatpush1.bf16.msra.mxu0 %v1630_v26  ;;  %v1651_v51 = vld [vmem:[#allocation8 + $0x30] ss:$8 sps:$4 sm:$0xff]  }
  0x80   :  { %729 = vmatprep.subr.bf16.mxu0 %v1631_v28  ;;  %1326 = vmatpush1.bf16.msra.mxu1 %v1645_v47 }
  0x81   :  { %227 = vadd.xlane.f32.xlu0 %v226_v57  ;;  %1327 = vmatprep.subr.bf16.mxu1 %v1646_v48  ;;  %v1657_v57 = vld [vmem:[#allocation8 + $0x50] ss:$8 sps:$4 sm:$0xff]  }
  0x83   :  { %230 = vadd.xlane.f32.xlu1 %v229_v63  ;;  %730 = vmatpush1.bf16.msra.mxu0 %v1633_v31  ;;  %v1660_v63 = vld [vmem:[#allocation8 + $0x60] ss:$8 sps:$4 sm:$0xff]  }
  0x84   :  { %731 = vmatprep.subr.bf16.mxu0 %v1634_v32  ;;  %1328 = vmatpush1.bf16.msra.mxu1 %v1648_v49 }
  0x85   :  { %153 = vadd.xlane.f32.xlu0 %v152_v7  ;;  %1329 = vmatprep.subr.bf16.mxu1 %v1649_v50  ;;  %v1663_v7 = vld [vmem:[#allocation8 + $0x70] ss:$8 sps:$4 sm:$0xff]  }
  0x87   :  { %156 = vadd.xlane.f32.xlu1 %v155_v17  ;;  %732 = vmatpush1.bf16.msra.mxu0 %v1636_v33 }
  0x88   :  { %733 = vmatprep.subr.bf16.mxu0 %v1637_v34  ;;  %1330 = vmatpush1.bf16.msra.mxu1 %v1651_v51  ;;  %v400_v51 = vshrl.u32 %v399_v38, 7 }
  0x89   :  { %233 = vadd.xlane.f32.xlu0 %v232_v25  ;;  %1331 = vmatprep.subr.bf16.mxu1 %v1652_v52 }
  0x8b   :  { %236 = vadd.xlane.f32.xlu1 %v235_v27  ;;  %734 = vmatpush1.bf16.msra.mxu0 %v1639_v35 }
  0x8c   :  { %1332 = vmatpush1.bf16.msra.mxu1 %v1654_v53 }
  0x8d   :  { %1333 = vmatprep.subr.bf16.mxu1 %v1655_v54 }
  0x90   :  { %1334 = vmatpush1.bf16.msra.mxu1 %v1657_v57 }
  0x91   :  { %1335 = vmatprep.subr.bf16.mxu1 %v1658_v62 }
  0x94   :  { %1336 = vmatpush1.bf16.msra.mxu1 %v1660_v63 }
  0x95   :  { %1337 = vmatprep.subr.bf16.mxu1 %v1661_v3 }
  0x98   :  { %1338 = vmatpush1.bf16.msra.mxu1 %v1663_v7 }
  0xda   :  { %v112_v8 = vpop.xlane.xlu0 %111 }
  0xdb   :  { %v238_v9 = vmul.f32 0.00390625, %v112_v8  ;;  %v2164_v8 = vsub.s32 0, %v400_v51 }
  0xdc   :  { %v192_v10 = vpop.xlane.xlu1 %191 }
  0xdd   :  { %v254_v17 = vmul.f32 0.00390625, %v192_v10  ;;  %v270_v19 = vmul.f32 %v238_v9, %v238_v9  ;;  %v2166_v10 = vsub.s32 1, %v400_v51 }
  0xde   :  { %v115_v20 = vpop.xlane.xlu0 %114 }
  0xdf   :  { %v286_v21 = vsub.f32 %v254_v17, %v270_v19  ;;  %v239_v25 = vmul.f32 0.00390625, %v115_v20  ;;  %v103_v20 = vld [vmem:[#allocation5] ss:$8 sm:$0x3] }
  0xe0   :  { %v195_v26 = vpop.xlane.xlu1 %194 }
  0xe1   :  { %v334_v27 = vadd.f32 1e-05, %v286_v21  ;;  %v255_v28 = vmul.f32 0.00390625, %v195_v26  ;;  %v271_v31 = vmul.f32 %v239_v25, %v239_v25  ;;  %v302_v21 = vsub.f32 %v1994_v0, %v238_v9 }
  0xe2   :  { %v118_v32 = vpop.xlane.xlu0 %117  ;;  %v303_v26 = vsub.f32 %v1996_v1, %v238_v9  ;;  %v305_v1 = vsub.f32 %v2006_v6, %v239_v25  ;;  %v304_v51 = vsub.f32 %v1998_v2, %v239_v25 }
  0xe3   :  { %1688 = vrsqrt.f32 %v334_v27  ;;  %v2154_v33 = vmul.f32 0.00390625, %v118_v32  ;;  %v287_v34 = vsub.f32 %v255_v28, %v271_v31 }
  0xe4   :  { %v121_v35 = vpop.xlane.xlu1 %120 }
  0xe5   :  { %v2156_v39 = vmul.f32 0.00390625, %v121_v35  ;;  %v272_v42 = vmul.f32 %v2154_v33, %v2154_v33  ;;  %v335_v47 = vadd.f32 1e-05, %v287_v34  ;;  %v105_v34 = vld [vmem:[#allocation5 + $0x1] ss:$8 sm:$0x3]  ;;  %v306_v2 = vsub.f32 %v2014_v11, %v2154_v33 }
  0xe6   :  { %v198_v48 = vpop.xlane.xlu0 %197  ;;  %v307_v25 = vsub.f32 %v2016_v12, %v2154_v33 }
  0xe7   :  { %v256_v49 = vmul.f32 0.00390625, %v198_v48  ;;  %1690 = vrsqrt.f32 %v335_v47  ;;  %v273_v53 = vmul.f32 %v2156_v39, %v2156_v39  ;;  %v2178_v47 = vrot.slane %v103_v20, %v2166_v10 }
  0xe8   :  { %v201_v50 = vpop.xlane.xlu1 %200  ;;  %v309_v11 = vsub.f32 %v2020_v15, %v2156_v39 }
  0xe9   :  { %v288_v52 = vsub.f32 %v256_v49, %v272_v42  ;;  %v257_v54 = vmul.f32 0.00390625, %v201_v50  ;;  %v2175_v42 = vrot.slane %v103_v20, %v2164_v8 }
  0xea   :  { %v124_v57 = vpop.xlane.xlu0 %123 }
  0xeb   :  { %v336_v62 = vadd.f32 1e-05, %v288_v52  ;;  %v289_v63 = vsub.f32 %v257_v54, %v273_v53  ;;  %v2162_v3 = vmul.f32 0.00390625, %v124_v57  ;;  %v2185_v53 = vrot.slane %v105_v34, %v2164_v8 }
  0xec   :  { %v127_v7 = vpop.xlane.xlu1 %126 }
  0xed   :  { %v1689_v17 = vpop.eup %1688  ;;  %1692 = vrsqrt.f32 %v336_v62  ;;  %v337_v19 = vadd.f32 1e-05, %v289_v63  ;;  %v2170_v27 = vmul.f32 0.00390625, %v127_v7  ;;  %v274_v28 = vmul.f32 %v2162_v3, %v2162_v3 }
  0xee   :  { %v204_v31 = vpop.xlane.xlu0 %203  ;;  %v367_v38 = vmul.f32 %v1689_v17, %v303_v26  ;;  %v366_v0 = vmul.f32 %v1689_v17, %v302_v21  ;;  %v2191_v17 = vrot.slane %v105_v34, %v2166_v10 }
  0xef   :  { %1694 = vrsqrt.f32 %v337_v19  ;;  %v258_v32 = vmul.f32 0.00390625, %v204_v31  ;;  %v275_v48 = vmul.f32 %v2170_v27, %v2170_v27 }
  0xf0   :  { %v207_v35 = vpop.xlane.xlu1 %206  ;;  %v410_v6 = vmul.f32 %v2178_v47, %v367_v38  ;;  %v409_v20 = vmul.f32 %v2175_v42, %v366_v0  ;;  %v308_v38 = vsub.f32 %v2018_v14, %v2156_v39 }
  0xf1   :  { %v290_v9 = vsub.f32 %v258_v32, %v274_v28  ;;  %v259_v49 = vmul.f32 0.00390625, %v207_v35  ;;  %v1691_v50 = vpop.eup %1690 }
  0xf2   :  { %v130_v52 = vpop.xlane.xlu0 %129  ;;  %v369_v63 = vmul.f32 %v1691_v50, %v305_v1  ;;  %v368_v19 = vmul.f32 %v1691_v50, %v304_v51  ;;  %v2211_v1 = vadd.f32 %v2191_v17, %v410_v6 }
  0xf3   :  { %v338_v54 = vadd.f32 1e-05, %v290_v9  ;;  %v291_v57 = vsub.f32 %v259_v49, %v275_v48  ;;  %v2187_v62 = vmul.f32 0.00390625, %v130_v52  ;;  %v2217_v48 = vadd.f32 %v2185_v53, %v409_v20 }
  0xf4   :  { %v133_v7 = vpop.xlane.xlu1 %132  ;;  %v412_v32 = vmul.f32 %v2178_v47, %v369_v63  ;;  %v411_v34 = vmul.f32 %v2175_v42, %v368_v19 }
  0xf5   :  { %1696 = vrsqrt.f32 %v338_v54  ;;  %v339_v21 = vadd.f32 1e-05, %v291_v57  ;;  %v2198_v26 = vmul.f32 0.00390625, %v133_v7  ;;  %v276_v28 = vmul.f32 %v2187_v62, %v2187_v62 }
  0xf6   :  { %v210_v31 = vpop.xlane.xlu0 %209  ;;  %v2214_v9 = vadd.f32 %v2191_v17, %v412_v32  ;;  %v2220_v15 = vadd.f32 %v2185_v53, %v411_v34  ;;  %v311_v34 = vsub.f32 %v2036_v24, %v2162_v3 }
  0xf7   :  { %v1693_v35 = vpop.eup %1692  ;;  %1698 = vrsqrt.f32 %v339_v21  ;;  %v260_v12 = vmul.f32 0.00390625, %v210_v31  ;;  %v277_v33 = vmul.f32 %v2198_v26, %v2198_v26 }
  0xf8   :  { %v213_v0 = vpop.xlane.xlu1 %212  ;;  %v371_v39 = vmul.f32 %v1693_v35, %v307_v25  ;;  %v485_v51 = vpack.c.bf16 %v2214_v9, %v2211_v1  ;;  %v370_v57 = vmul.f32 %v1693_v35, %v306_v2  ;;  %v484_v20 = vpack.c.bf16 %v2220_v15, %v2217_v48 }
  0xf9   :  { %v1695_v49 = vpop.eup %1694  ;;  %v292_v14 = vsub.f32 %v260_v12, %v276_v28  ;;  %v261_v50 = vmul.f32 0.00390625, %v213_v0  ;;  %v310_v2 = vsub.f32 %v2034_v22, %v2162_v3 }
  0xfa   :  { %v136_v52 = vpop.xlane.xlu0 %135  ;;  %v373_v54 = vmul.f32 %v1695_v49, %v309_v11  ;;  %v372_v63 = vmul.f32 %v1695_v49, %v308_v38  ;;  %735 = vmatprep.mubr.bf16.mxu0 %v485_v51  ;;  %v414_v28 = vmul.f32 %v2178_v47, %v371_v39  ;;  %v413_v31 = vmul.f32 %v2175_v42, %v370_v57 }
  0xfb   :  { %v340_v7 = vadd.f32 1e-05, %v292_v14  ;;  %v293_v6 = vsub.f32 %v261_v50, %v277_v33  ;;  %v2224_v19 = vmul.f32 0.00390625, %v136_v52  ;;  %736 = vmatmul.mubr.bf16.vlgmr.msra.gmra.mrb[0].mxu0 %v484_v20  ;;  %v312_v14 = vsub.f32 %v2038_v29, %v2170_v27 }
  0xfc   :  { %v139_v21 = vpop.xlane.xlu1 %138  ;;  %v416_v25 = vmul.f32 %v2178_v47, %v373_v54  ;;  %v415_v32 = vmul.f32 %v2175_v42, %v372_v63  ;;  %v2241_v33 = vadd.f32 %v2191_v17, %v414_v28  ;;  %v2247_v24 = vadd.f32 %v2185_v53, %v413_v31 }
  0xfd   :  { %1700 = vrsqrt.f32 %v340_v7  ;;  %v341_v35 = vadd.f32 1e-05, %v293_v6  ;;  %v2236_v38 = vmul.f32 0.00390625, %v139_v21  ;;  %v278_v11 = vmul.f32 %v2224_v19, %v2224_v19 }
  0xfe   :  { %v216_v12 = vpop.xlane.xlu0 %215  ;;  %v2244_v0 = vadd.f32 %v2191_v17, %v416_v25  ;;  %v2250_v3 = vadd.f32 %v2185_v53, %v415_v32  ;;  %v313_v50 = vsub.f32 %v2040_v30, %v2170_v27 }
  0xff   :  { %v1697_v49 = vpop.eup %1696  ;;  %1702 = vrsqrt.f32 %v341_v35  ;;  %v262_v22 = vmul.f32 0.00390625, %v216_v12  ;;  %v279_v39 = vmul.f32 %v2236_v38, %v2236_v38 }
 0x100   :  { %v219_v51 = vpop.xlane.xlu1 %218  ;;  %v487_v52 = vpack.c.bf16 %v2244_v0, %v2241_v33  ;;  %v486_v7 = vpack.c.bf16 %v2250_v3, %v2247_v24  ;;  %v375_v6 = vmul.f32 %v1697_v49, %v311_v34  ;;  %v374_v21 = vmul.f32 %v1697_v49, %v310_v2 }
 0x101   :  { %v1699_v54 = vpop.eup %1698  ;;  %v294_v57 = vsub.f32 %v262_v22, %v278_v11  ;;  %v263_v63 = vmul.f32 0.00390625, %v219_v51  ;;  %v314_v34 = vsub.f32 %v2054_v40, %v2187_v62  ;;  %v315_v2 = vsub.f32 %v2056_v41, %v2187_v62 }
 0x102   :  { %745 = vmatprep.mubr.bf16.mxu0 %v487_v52  ;;  %v142_v20 = vpop.xlane.xlu0 %141  ;;  %v377_v29 = vmul.f32 %v1699_v54, %v313_v50  ;;  %v376_v28 = vmul.f32 %v1699_v54, %v312_v14  ;;  %v418_v31 = vmul.f32 %v2178_v47, %v375_v6  ;;  %v417_v11 = vmul.f32 %v2175_v42, %v374_v21 }
 0x103   :  { %v342_v30 = vadd.f32 1e-05, %v294_v57  ;;  %v295_v27 = vsub.f32 %v263_v63, %v279_v39  ;;  %v2262_v25 = vmul.f32 0.00390625, %v142_v20  ;;  %746 = vmatmul.mubr.bf16.gmra.mrb[4].mxu0 %v486_v7  ;;  %v316_v54 = vsub.f32 %v2058_v45, %v2198_v26 }
 0x104   :  { %v145_v32 = vpop.xlane.xlu1 %144  ;;  %v420_v35 = vmul.f32 %v2178_v47, %v377_v29  ;;  %v419_v12 = vmul.f32 %v2175_v42, %v376_v28  ;;  %v2277_v39 = vadd.f32 %v2191_v17, %v418_v31  ;;  %v2283_v41 = vadd.f32 %v2185_v53, %v417_v11 }
 0x105   :  { %1704 = vrsqrt.f32 %v342_v30  ;;  %v343_v49 = vadd.f32 1e-05, %v295_v27  ;;  %v2272_v22 = vmul.f32 0.00390625, %v145_v32  ;;  %v280_v14 = vmul.f32 %v2262_v25, %v2262_v25 }
 0x106   :  { %v222_v50 = vpop.xlane.xlu0 %221  ;;  %v2280_v51 = vadd.f32 %v2191_v17, %v420_v35  ;;  %v2286_v62 = vadd.f32 %v2185_v53, %v419_v12  ;;  %v317_v57 = vsub.f32 %v2060_v46, %v2198_v26 }
 0x107   :  { %v1701_v52 = vpop.eup %1700  ;;  %1706 = vrsqrt.f32 %v343_v49  ;;  %v264_v40 = vmul.f32 0.00390625, %v222_v50  ;;  %v281_v63 = vmul.f32 %v2272_v22, %v2272_v22 }
 0x108   :  { %v225_v7 = vpop.xlane.xlu1 %224  ;;  %v489_v6 = vpack.c.bf16 %v2280_v51, %v2277_v39  ;;  %v488_v28 = vpack.c.bf16 %v2286_v62, %v2283_v41  ;;  %v379_v30 = vmul.f32 %v1701_v52, %v315_v2  ;;  %v378_v31 = vmul.f32 %v1701_v52, %v314_v34 }
 0x109   :  { %v1703_v20 = vpop.eup %1702  ;;  %v296_v29 = vsub.f32 %v264_v40, %v280_v14  ;;  %v265_v21 = vmul.f32 0.00390625, %v225_v7  ;;  %v318_v2 = vsub.f32 %v2074_v55, %v2224_v19  ;;  %v319_v34 = vsub.f32 %v2076_v56, %v2224_v19 }
 0x10a   :  { %755 = vmatprep.mubr.bf16.mxu0 %v489_v6  ;;  %v148_v27 = vpop.xlane.xlu0 %147  ;;  %v381_v45 = vmul.f32 %v1703_v20, %v317_v57  ;;  %v380_v32 = vmul.f32 %v1703_v20, %v316_v54  ;;  %v422_v11 = vmul.f32 %v2178_v47, %v379_v30  ;;  %v421_v14 = vmul.f32 %v2175_v42, %v378_v31 }
 0x10b   :  { %v344_v46 = vadd.f32 1e-05, %v296_v29  ;;  %v297_v26 = vsub.f32 %v265_v21, %v281_v63  ;;  %v2298_v35 = vmul.f32 0.00390625, %v148_v27  ;;  %756 = vmatmul.mubr.bf16.gmra.mrb[8].mxu0 %v488_v28  ;;  %v320_v20 = vsub.f32 %v2078_v58, %v2236_v38 }
 0x10c   :  { %v151_v12 = vpop.xlane.xlu1 %150  ;;  %v424_v49 = vmul.f32 %v2178_v47, %v381_v45  ;;  %v423_v50 = vmul.f32 %v2175_v42, %v380_v32  ;;  %v2313_v63 = vadd.f32 %v2191_v17, %v422_v11  ;;  %v2319_v56 = vadd.f32 %v2185_v53, %v421_v14 }
 0x10d   :  { %1708 = vrsqrt.f32 %v344_v46  ;;  %v345_v52 = vadd.f32 1e-05, %v297_v26  ;;  %v2308_v40 = vmul.f32 0.00390625, %v151_v12  ;;  %v282_v54 = vmul.f32 %v2298_v35, %v2298_v35 }
 0x10e   :  { %v228_v57 = vpop.xlane.xlu0 %227  ;;  %2824 = vst [vmem:[#allocation15_spill] sm:$0xff] %v2313_v63  ;;  %v2316_v7 = vadd.f32 %v2191_v17, %v424_v49  ;;  %2826 = vst [vmem:[#allocation17_spill] sm:$0xff] %v2319_v56  ;;  %v2322_v19 = vadd.f32 %v2185_v53, %v423_v50  ;;  %v321_v29 = vsub.f32 %v2080_v59, %v2236_v38 }
 0x10f   :  { %v1705_v6 = vpop.eup %1704  ;;  %1710 = vrsqrt.f32 %v345_v52  ;;  %v266_v55 = vmul.f32 0.00390625, %v228_v57  ;;  %v283_v21 = vmul.f32 %v2308_v40, %v2308_v40 }
 0x110   :  { %2825 = vst [vmem:[#allocation16_spill] sm:$0xff] %v2316_v7  ;;  %2827 = vst [vmem:[#allocation18_spill] sm:$0xff] %v2322_v19  ;;  %v231_v28 = vpop.xlane.xlu1 %230  ;;  %v491_v30 = vpack.c.bf16 %v2316_v7, %v2313_v63  ;;  %v490_v32 = vpack.c.bf16 %v2322_v19, %v2319_v56  ;;  %v383_v46 = vmul.f32 %v1705_v6, %v319_v34 }
 0x111   :  { %v1707_v27 = vpop.eup %1706  ;;  %v298_v45 = vsub.f32 %v266_v55, %v282_v54  ;;  %v267_v31 = vmul.f32 0.00390625, %v231_v28  ;;  %v382_v11 = vmul.f32 %v1705_v6, %v318_v2  ;;  %v322_v34 = vsub.f32 %v2094_v13, %v2262_v25 }
 0x112   :  { %765 = vmatprep.mubr.bf16.mxu0 %v491_v30  ;;  %v154_v26 = vpop.xlane.xlu0 %153  ;;  %v385_v58 = vmul.f32 %v1707_v27, %v321_v29  ;;  %v384_v12 = vmul.f32 %v1707_v27, %v320_v20  ;;  %v426_v14 = vmul.f32 %v2178_v47, %v383_v46  ;;  %v323_v2 = vsub.f32 %v2096_v16, %v2262_v25 }
 0x113   :  { %v346_v59 = vadd.f32 1e-05, %v298_v45  ;;  %v299_v38 = vsub.f32 %v267_v31, %v283_v21  ;;  %v2334_v49 = vmul.f32 0.00390625, %v154_v26  ;;  %v425_v54 = vmul.f32 %v2175_v42, %v382_v11  ;;  %766 = vmatmul.mubr.bf16.gmra.mrb[12].mxu0 %v490_v32 }
 0x114   :  { %v157_v50 = vpop.xlane.xlu1 %156  ;;  %v428_v52 = vmul.f32 %v2178_v47, %v385_v58  ;;  %v427_v57 = vmul.f32 %v2175_v42, %v384_v12  ;;  %v2349_v21 = vadd.f32 %v2191_v17, %v426_v14  ;;  %v324_v27 = vsub.f32 %v2098_v18, %v2272_v22 }
 0x115   :  { %1712 = vrsqrt.f32 %v346_v59  ;;  %v347_v6 = vadd.f32 1e-05, %v299_v38  ;;  %v2344_v55 = vmul.f32 0.00390625, %v157_v50  ;;  %v284_v20 = vmul.f32 %v2334_v49, %v2334_v49 }
 0x116   :  { %v234_v29 = vpop.xlane.xlu0 %233  ;;  %2828 = vst [vmem:[#allocation19_spill] sm:$0xff] %v2349_v21  ;;  %v2352_v28 = vadd.f32 %v2191_v17, %v428_v52  ;;  %v2355_v16 = vadd.f32 %v2185_v53, %v425_v54  ;;  %v2358_v25 = vadd.f32 %v2185_v53, %v427_v57  ;;  %v325_v45 = vsub.f32 %v2100_v23, %v2272_v22 }
 0x117   :  { %v1709_v30 = vpop.eup %1708  ;;  %1714 = vrsqrt.f32 %v347_v6  ;;  %v268_v13 = vmul.f32 0.00390625, %v234_v29  ;;  %v285_v31 = vmul.f32 %v2344_v55, %v2344_v55  ;;  %v326_v6 = vsub.f32 %v2114_v36, %v2298_v35 }
 0x118   :  { %2829 = vst [vmem:[#allocation20_spill] sm:$0xff] %v2352_v28  ;;  %2830 = vst [vmem:[#allocation21_spill] sm:$0xff] %v2355_v16  ;;  %v237_v32 = vpop.xlane.xlu1 %236  ;;  %v493_v46 = vpack.c.bf16 %v2352_v28, %v2349_v21  ;;  %v492_v12 = vpack.c.bf16 %v2358_v25, %v2355_v16  ;;  %v387_v59 = vmul.f32 %v1709_v30, %v323_v2 }
 0x119   :  { %2831 = vst [vmem:[#allocation22_spill] sm:$0xff] %v2358_v25  ;;  %v1711_v26 = vpop.eup %1710  ;;  %v300_v58 = vsub.f32 %v268_v13, %v284_v20  ;;  %v269_v11 = vmul.f32 0.00390625, %v237_v32  ;;  %v386_v18 = vmul.f32 %v1709_v30, %v322_v34  ;;  %v327_v34 = vsub.f32 %v2116_v37, %v2298_v35 }
 0x11a   :  { %775 = vmatprep.mubr.bf16.mxu0 %v493_v46  ;;  %v389_v38 = vmul.f32 %v1711_v26, %v325_v45  ;;  %v388_v14 = vmul.f32 %v1711_v26, %v324_v27  ;;  %v430_v22 = vmul.f32 %v2178_v47, %v387_v59  ;;  %v328_v27 = vsub.f32 %v2118_v43, %v2308_v40 }
 0x11b   :  { %v348_v50 = vadd.f32 1e-05, %v300_v58  ;;  %v301_v23 = vsub.f32 %v269_v11, %v285_v31  ;;  %v429_v54 = vmul.f32 %v2175_v42, %v386_v18  ;;  %776 = vmatmul.mubr.bf16.gmra.mrb[16].mxu0 %v492_v12  ;;  %v329_v37 = vsub.f32 %v2120_v44, %v2308_v40 }
 0x11c   :  { %v432_v52 = vmul.f32 %v2178_v47, %v389_v38  ;;  %v431_v57 = vmul.f32 %v2175_v42, %v388_v14  ;;  %v2379_v2 = vadd.f32 %v2191_v17, %v430_v22  ;;  %v330_v40 = vsub.f32 %v2134_v60, %v2334_v49 }
 0x11d   :  { %1716 = vrsqrt.f32 %v348_v50  ;;  %v349_v20 = vadd.f32 1e-05, %v301_v23  ;;  %v2390_v36 = vadd.f32 %v2185_v53, %v429_v54  ;;  %v331_v59 = vsub.f32 %v2136_v61, %v2334_v49 }
 0x11e   :  { %2832 = vst [vmem:[#allocation23_spill] sm:$0xff] %v2379_v2  ;;  %v2382_v29 = vadd.f32 %v2191_v17, %v432_v52  ;;  %v2385_v30 = vadd.f32 %v2185_v53, %v431_v57  ;;  %v332_v23 = vsub.f32 %v2138_v4, %v2344_v55  ;;  %v333_v60 = vsub.f32 %v2140_v5, %v2344_v55 }
 0x11f   :  { %v1713_v13 = vpop.eup %1712  ;;  %1718 = vrsqrt.f32 %v349_v20  ;;  %2835 = vst [vmem:[#allocation26_spill] sm:$0xff] %v2390_v36 }
 0x120   :  { %2833 = vst [vmem:[#allocation24_spill] sm:$0xff] %v2382_v29  ;;  %2834 = vst [vmem:[#allocation25_spill] sm:$0xff] %v2385_v30  ;;  %v495_v35 = vpack.c.bf16 %v2382_v29, %v2379_v2  ;;  %v391_v45 = vmul.f32 %v1713_v13, %v327_v34  ;;  %v390_v31 = vmul.f32 %v1713_v13, %v326_v6 }
 0x121   :  { %v1715_v32 = vpop.eup %1714  ;;  %v494_v46 = vpack.c.bf16 %v2385_v30, %v2390_v36 }
 0x122   :  { %785 = vmatprep.mubr.bf16.mxu0 %v495_v35  ;;  %v393_v26 = vmul.f32 %v1715_v32, %v329_v37  ;;  %v434_v43 = vmul.f32 %v2178_v47, %v391_v45  ;;  %v392_v58 = vmul.f32 %v1715_v32, %v328_v27  ;;  %v433_v11 = vmul.f32 %v2175_v42, %v390_v31  ;;  %v1666_v31 = vld [vmem:[#allocation8 + $0x80] ss:$8 sps:$4 sm:$0xff]   ;;  %v1669_v32 = vld [vmem:[#allocation8 + $0x90] ss:$8 sps:$4 sm:$0xff]  }
 0x123   :  { %786 = vmatmul.mubr.bf16.gmra.mrb[20].mxu0 %v494_v46  ;;  %v1670_v46 = vld [vmem:[#allocation8 + $0xa4] ss:$8 sps:$4 sm:$0xff]  }
 0x124   :  { %v436_v12 = vmul.f32 %v2178_v47, %v393_v26  ;;  %v435_v44 = vmul.f32 %v2175_v42, %v392_v58  ;;  %v2407_v38 = vadd.f32 %v2191_v17, %v434_v43  ;;  %v2418_v22 = vadd.f32 %v2185_v53, %v433_v11  ;;  %v1672_v26 = vld [vmem:[#allocation8 + $0xa0] ss:$8 sps:$4 sm:$0xff]   ;;  %v1675_v43 = vld [vmem:[#allocation8 + $0xb0] ss:$8 sps:$4 sm:$0xff]   ;;  %v1676_v58 = vld [vmem:[#allocation8 + $0xc4] ss:$8 sps:$4 sm:$0xff]  }
 0x125   :  { %v1678_v11 = vld [vmem:[#allocation8 + $0xc0] ss:$8 sps:$4 sm:$0xff]  }
 0x126   :  { %2836 = vst [vmem:[#allocation27_spill] sm:$0xff] %v2407_v38  ;;  %v2410_v18 = vadd.f32 %v2191_v17, %v436_v12  ;;  %v2413_v14 = vadd.f32 %v2185_v53, %v435_v44  ;;  %2839 = vst [vmem:[#allocation30_spill] sm:$0xff] %v2418_v22  ;;  %v1679_v12 = vld [vmem:[#allocation8 + $0xd4] ss:$8 sps:$4 sm:$0xff]   ;;  %v1681_v44 = vld [vmem:[#allocation8 + $0xd0] ss:$8 sps:$4 sm:$0xff]  }
 0x127   :  { %v1717_v50 = vpop.eup %1716 }
 0x128   :  { %2837 = vst [vmem:[#allocation28_spill] sm:$0xff] %v2410_v18  ;;  %2838 = vst [vmem:[#allocation29_spill] sm:$0xff] %v2413_v14  ;;  %v497_v61 = vpack.c.bf16 %v2410_v18, %v2407_v38  ;;  %v395_v49 = vmul.f32 %v1717_v50, %v331_v59  ;;  %v394_v52 = vmul.f32 %v1717_v50, %v330_v40  ;;  %v1682_v40 = vld [vmem:[#allocation8 + $0xe4] ss:$8 sps:$4 sm:$0xff]   ;;  %v1684_v59 = vld [vmem:[#allocation8 + $0xe0] ss:$8 sps:$4 sm:$0xff]  }
 0x129   :  { %v1719_v54 = vpop.eup %1718  ;;  %v496_v57 = vpack.c.bf16 %v2413_v14, %v2418_v22  ;;  %v1685_v50 = vld [vmem:[#allocation8 + $0xf4] ss:$8 sps:$4 sm:$0xff]  }
 0x12a   :  { %795 = vmatprep.mubr.bf16.mxu0 %v497_v61  ;;  %v397_v6 = vmul.f32 %v1719_v54, %v333_v60  ;;  %v438_v20 = vmul.f32 %v2178_v47, %v395_v49  ;;  %v396_v4 = vmul.f32 %v1719_v54, %v332_v23  ;;  %v437_v34 = vmul.f32 %v2175_v42, %v394_v52  ;;  %v1687_v23 = vld [vmem:[#allocation8 + $0xf0] ss:$8 sps:$4 sm:$0xff]  }
 0x12b   :  { %796 = vmatmul.mubr.bf16.gmra.mrb[24].mxu0 %v496_v57  ;;  %v107_v60 = vld [vmem:[#allocation5 + $0x2] ss:$8 sm:$0x3] }
 0x12c   :  { %v440_v13 = vmul.f32 %v2178_v47, %v397_v6  ;;  %v439_v5 = vmul.f32 %v2175_v42, %v396_v4  ;;  %v2431_v55 = vadd.f32 %v2191_v17, %v438_v20  ;;  %v2440_v35 = vadd.f32 %v2185_v53, %v437_v34  ;;  %v1664_v42 = vld [vmem:[#allocation8 + $0x84] ss:$8 sps:$4 sm:$0xff]  }
 0x12d   :  { %1339 = vmatprep.subr.bf16.mxu1 %v1664_v42  ;;  %v2447_v61 = vrot.slane %v107_v60, %v2164_v8  ;;  %v2450_v49 = vrot.slane %v107_v60, %v2166_v10 }
 0x12e   :  { %2840 = vst [vmem:[#allocation31_spill] sm:$0xff] %v2431_v55  ;;  %v2434_v27 = vadd.f32 %v2191_v17, %v440_v13  ;;  %v2437_v37 = vadd.f32 %v2185_v53, %v439_v5  ;;  %2843 = vst [vmem:[#allocation34_spill] sm:$0xff] %v2440_v35  ;;  %1340 = vmatpush1.bf16.msra.mxu1 %v1666_v31  ;;  %v1667_v17 = vld [vmem:[#allocation8 + $0x94] ss:$8 sps:$4 sm:$0xff]  }
 0x12f   :  { %1341 = vmatprep.subr.bf16.mxu1 %v1667_v17  ;;  %v1673_v53 = vld [vmem:[#allocation8 + $0xb4] ss:$8 sps:$4 sm:$0xff]  }
 0x130   :  { %2841 = vst [vmem:[#allocation32_spill] sm:$0xff] %v2434_v27  ;;  %2842 = vst [vmem:[#allocation33_spill] sm:$0xff] %v2437_v37  ;;  %v499_v45 = vpack.c.bf16 %v2434_v27, %v2431_v55  ;;  %v498_v47 = vpack.c.bf16 %v2437_v37, %v2440_v35 }
 0x132   :  { %805 = vmatprep.mubr.bf16.mxu0 %v499_v45  ;;  %1342 = vmatpush1.bf16.msra.mxu1 %v1669_v32 }
 0x133   :  { %806 = vmatmul.mubr.bf16.gmra.mrb[28].mxu0 %v498_v47  ;;  %1343 = vmatprep.subr.bf16.mxu1 %v1670_v46 }
 0x136   :  { %1344 = vmatpush1.bf16.msra.mxu1 %v1672_v26 }
 0x137   :  { %1345 = vmatprep.subr.bf16.mxu1 %v1673_v53 }
 0x13a   :  { %1346 = vmatpush1.bf16.msra.mxu1 %v1675_v43 }
 0x13b   :  { %1347 = vmatprep.subr.bf16.mxu1 %v1676_v58 }
 0x13e   :  { %1348 = vmatpush1.bf16.msra.mxu1 %v1678_v11 }
 0x13f   :  { %1349 = vmatprep.subr.bf16.mxu1 %v1679_v12 }
 0x142   :  { %1350 = vmatpush1.bf16.msra.mxu1 %v1681_v44 }
 0x143   :  { %1351 = vmatprep.subr.bf16.mxu1 %v1682_v40 }
 0x146   :  { %1352 = vmatpush1.bf16.msra.mxu1 %v1684_v59 }
 0x147   :  { %1353 = vmatprep.subr.bf16.mxu1 %v1685_v50 }
 0x14a   :  { %1354 = vmatpush1.bf16.msra.mxu1 %v1687_v23 }
 0x1ce   :  { %v737_v52 = vpop.f32.mrb[0].mxu0 }
 0x1cf   :  { %v738_v54 = vadd.f32 %v737_v52, %v2447_v61  ;;  %v739_v57 = vpop.f32.mrb[1].mxu0 }
 0x1d0   :  { %v740_v6 = vadd.f32 %v739_v57, %v2450_v49  ;;  %v741_v20 = vpop.f32.mrb[2].mxu0 }
 0x1d1   :  { %v848_v4 = vmul.f32 %v738_v54, %v738_v54  ;;  %v742_v34 = vadd.f32 %v741_v20, %v2447_v61  ;;  %v743_v13 = vpop.f32.mrb[3].mxu0  ;;  %v2458_v11 = vmul.f32 0.5, %v738_v54 }
 0x1d2   :  { %v849_v5 = vmul.f32 %v740_v6, %v740_v6  ;;  %v744_v45 = vadd.f32 %v743_v13, %v2450_v49  ;;  %v2456_v58 = vmul.f32 0.5, %v740_v6 }
 0x1d3   :  { %v880_v47 = vmul.f32 %v848_v4, %v738_v54  ;;  %v850_v42 = vmul.f32 %v742_v34, %v742_v34  ;;  %v2461_v50 = vmul.f32 0.5, %v742_v34 }
 0x1d4   :  { %v881_v31 = vmul.f32 %v849_v5, %v740_v6  ;;  %v851_v17 = vmul.f32 %v744_v45, %v744_v45  ;;  %v2464_v57 = vmul.f32 0.5, %v744_v45 }
 0x1d5   :  { %v912_v32 = vmul.f32 0.044715, %v880_v47  ;;  %v882_v46 = vmul.f32 %v850_v42, %v742_v34 }
 0x1d6   :  { %v913_v26 = vmul.f32 0.044715, %v881_v31  ;;  %v883_v53 = vmul.f32 %v851_v17, %v744_v45  ;;  %v747_v43 = vpop.f32.mrb[4].mxu0 }
 0x1d7   :  { %v944_v12 = vadd.f32 %v912_v32, %v738_v54  ;;  %v914_v44 = vmul.f32 0.044715, %v882_v46  ;;  %v748_v40 = vadd.f32 %v747_v43, %v2447_v61  ;;  %v749_v59 = vpop.f32.mrb[5].mxu0 }
 0x1d8   :  { %v915_v23 = vmul.f32 0.044715, %v883_v53  ;;  %v750_v60 = vadd.f32 %v749_v59, %v2450_v49  ;;  %v751_v52 = vpop.f32.mrb[6].mxu0  ;;  %v945_v20 = vadd.f32 %v913_v26, %v740_v6 }
 0x1d9   :  { %v976_v4 = vmul.f32 0.7978846, %v944_v12  ;;  %v946_v13 = vadd.f32 %v914_v44, %v742_v34  ;;  %v852_v5 = vmul.f32 %v748_v40, %v748_v40  ;;  %v752_v47 = vadd.f32 %v751_v52, %v2447_v61  ;;  %v753_v42 = vpop.f32.mrb[7].mxu0 }
 0x1da   :  { %v853_v54 = vmul.f32 %v750_v60, %v750_v60  ;;  %v754_v31 = vadd.f32 %v753_v42, %v2450_v49  ;;  %v947_v17 = vadd.f32 %v915_v23, %v744_v45  ;;  %v977_v32 = vmul.f32 0.7978846, %v945_v20 }
 0x1db   :  { %1720 = vtanh.f32 %v976_v4  ;;  %v978_v46 = vmul.f32 0.7978846, %v946_v13  ;;  %v884_v53 = vmul.f32 %v852_v5, %v748_v40  ;;  %v854_v43 = vmul.f32 %v752_v47, %v752_v47 }
 0x1dc   :  { %v885_v59 = vmul.f32 %v853_v54, %v750_v60  ;;  %v855_v27 = vmul.f32 %v754_v31, %v754_v31  ;;  %v979_v37 = vmul.f32 0.7978846, %v947_v17  ;;  %1722 = vtanh.f32 %v977_v32 }
 0x1dd   :  { %1724 = vtanh.f32 %v978_v46  ;;  %v916_v6 = vmul.f32 0.044715, %v884_v53  ;;  %v886_v34 = vmul.f32 %v854_v43, %v752_v47  ;;  %v2468_v26 = vmul.f32 0.5, %v750_v60 }
 0x1de   :  { %v917_v12 = vmul.f32 0.044715, %v885_v59  ;;  %v887_v44 = vmul.f32 %v855_v27, %v754_v31  ;;  %v757_v52 = vpop.f32.mrb[8].mxu0  ;;  %1726 = vtanh.f32 %v979_v37  ;;  %v2470_v42 = vmul.f32 0.5, %v754_v31 }
 0x1df   :  { %v948_v45 = vadd.f32 %v916_v6, %v748_v40  ;;  %v918_v23 = vmul.f32 0.044715, %v886_v34  ;;  %v2473_v20 = vadd.f32 %v757_v52, %v2447_v61  ;;  %v759_v4 = vpop.f32.mrb[9].mxu0  ;;  %v2475_v13 = vmul.f32 0.5, %v748_v40 }
 0x1e0   :  { %v949_v5 = vadd.f32 %v917_v12, %v750_v60  ;;  %v919_v54 = vmul.f32 0.044715, %v887_v44  ;;  %v760_v17 = vadd.f32 %v759_v4, %v2450_v49  ;;  %v761_v32 = vpop.f32.mrb[10].mxu0  ;;  %v2478_v46 = vmul.f32 0.5, %v752_v47 }
 0x1e1   :  { %v980_v27 = vmul.f32 0.7978846, %v948_v45  ;;  %v950_v53 = vadd.f32 %v918_v23, %v752_v47  ;;  %v856_v37 = vmul.f32 %v2473_v20, %v2473_v20  ;;  %v2483_v43 = vadd.f32 %v761_v32, %v2447_v61  ;;  %v763_v59 = vpop.f32.mrb[11].mxu0 }
 0x1e2   :  { %v981_v6 = vmul.f32 0.7978846, %v949_v5  ;;  %v951_v34 = vadd.f32 %v919_v54, %v754_v31  ;;  %v857_v40 = vmul.f32 %v760_v17, %v760_v17  ;;  %v2486_v60 = vadd.f32 %v763_v59, %v2450_v49 }
 0x1e3   :  { %1728 = vtanh.f32 %v980_v27  ;;  %v982_v12 = vmul.f32 0.7978846, %v950_v53  ;;  %v888_v44 = vmul.f32 %v856_v37, %v2473_v20  ;;  %v858_v47 = vmul.f32 %v2483_v43, %v2483_v43 }
 0x1e4   :  { %1730 = vtanh.f32 %v981_v6  ;;  %v983_v52 = vmul.f32 0.7978846, %v951_v34  ;;  %v889_v45 = vmul.f32 %v857_v40, %v760_v17  ;;  %v859_v23 = vmul.f32 %v2486_v60, %v2486_v60 }
 0x1e5   :  { %v1721_v4 = vpop.eup %1720  ;;  %1732 = vtanh.f32 %v982_v12  ;;  %v920_v31 = vmul.f32 0.044715, %v888_v44  ;;  %v890_v5 = vmul.f32 %v858_v47, %v2483_v43  ;;  %v2494_v54 = vmul.f32 0.5, %v760_v17 }
 0x1e6   :  { %v1723_v32 = vpop.eup %1722  ;;  %1734 = vtanh.f32 %v983_v52  ;;  %v921_v27 = vmul.f32 0.044715, %v889_v45  ;;  %v891_v53 = vmul.f32 %v859_v23, %v2486_v60  ;;  %v767_v37 = vpop.f32.mrb[12].mxu0  ;;  %v1040_v59 = vadd.f32 1.0, %v1721_v4 }
 0x1e7   :  { %v1725_v6 = vpop.eup %1724  ;;  %v952_v34 = vadd.f32 %v920_v31, %v2473_v20  ;;  %v922_v40 = vmul.f32 0.044715, %v890_v5  ;;  %v2499_v55 = vadd.f32 %v767_v37, %v2447_v61  ;;  %v769_v12 = vpop.f32.mrb[13].mxu0  ;;  %v1041_v44 = vadd.f32 1.0, %v1723_v32 }
 0x1e8   :  { %v1727_v35 = vpop.eup %1726  ;;  %v953_v47 = vadd.f32 %v921_v27, %v760_v17  ;;  %v923_v18 = vmul.f32 0.044715, %v891_v53  ;;  %v2502_v14 = vadd.f32 %v769_v12, %v2450_v49  ;;  %v771_v52 = vpop.f32.mrb[14].mxu0  ;;  %v1042_v45 = vadd.f32 1.0, %v1725_v6 }
 0x1e9   :  { %v984_v23 = vmul.f32 0.7978846, %v952_v34  ;;  %v954_v4 = vadd.f32 %v922_v40, %v2483_v43  ;;  %v860_v31 = vmul.f32 %v2499_v55, %v2499_v55  ;;  %v2508_v5 = vadd.f32 %v771_v52, %v2447_v61  ;;  %v773_v37 = vpop.f32.mrb[15].mxu0 }
 0x1ea   :  { %v985_v38 = vmul.f32 0.7978846, %v953_v47  ;;  %v955_v32 = vadd.f32 %v923_v18, %v2486_v60  ;;  %v861_v17 = vmul.f32 %v2502_v14, %v2502_v14  ;;  %v2514_v27 = vadd.f32 %v773_v37, %v2450_v49 }
 0x1eb   :  { %1736 = vtanh.f32 %v984_v23  ;;  %v986_v53 = vmul.f32 0.7978846, %v954_v4  ;;  %v892_v6 = vmul.f32 %v860_v31, %v2499_v55  ;;  %v862_v34 = vmul.f32 %v2508_v5, %v2508_v5 }
 0x1ec   :  { %1738 = vtanh.f32 %v985_v38  ;;  %v987_v40 = vmul.f32 0.7978846, %v955_v32  ;;  %v893_v12 = vmul.f32 %v861_v17, %v2502_v14  ;;  %v863_v18 = vmul.f32 %v2514_v27, %v2514_v27 }
 0x1ed   :  { %v2522_v47 = vpop.eup %1728  ;;  %1740 = vtanh.f32 %v986_v53  ;;  %v924_v52 = vmul.f32 0.044715, %v892_v6  ;;  %v894_v37 = vmul.f32 %v862_v34, %v2508_v5  ;;  %v1043_v23 = vadd.f32 1.0, %v1727_v35 }
 0x1ee   :  { %v1731_v4 = vpop.eup %1730  ;;  %1742 = vtanh.f32 %v987_v40  ;;  %v925_v31 = vmul.f32 0.044715, %v893_v12  ;;  %v895_v22 = vmul.f32 %v863_v18, %v2514_v27  ;;  %v777_v29 = vpop.f32.mrb[16].mxu0  ;;  %v1073_v38 = vmul.f32 %v1041_v44, %v2456_v58 }
 0x1ef   :  { %v2527_v32 = vpop.eup %1732  ;;  %v956_v17 = vadd.f32 %v924_v52, %v2499_v55  ;;  %v926_v30 = vmul.f32 0.044715, %v894_v37  ;;  %v2531_v2 = vadd.f32 %v777_v29, %v2447_v61  ;;  %v779_v53 = vpop.f32.mrb[17].mxu0  ;;  %v1075_v6 = vmul.f32 %v1043_v23, %v2464_v57 }
 0x1f0   :  { %v1735_v35 = vpop.eup %1734  ;;  %v957_v34 = vadd.f32 %v925_v31, %v2502_v14  ;;  %v927_v40 = vmul.f32 0.044715, %v895_v22  ;;  %v2536_v12 = vadd.f32 %v779_v53, %v2450_v49  ;;  %v781_v18 = vpop.f32.mrb[18].mxu0  ;;  %v1072_v58 = vmul.f32 %v1040_v59, %v2458_v11 }
 0x1f1   :  { %v988_v44 = vmul.f32 0.7978846, %v956_v17  ;;  %v958_v52 = vadd.f32 %v926_v30, %v2508_v5  ;;  %v864_v29 = vmul.f32 %v2531_v2, %v2531_v2  ;;  %v1105_v37 = vpack.c.bf16 %v1075_v6, %v1073_v38  ;;  %v783_v36 = vpop.f32.mrb[19].mxu0 }
 0x1f2   :  { %v989_v28 = vmul.f32 0.7978846, %v957_v34  ;;  %v959_v57 = vadd.f32 %v927_v40, %v2514_v27  ;;  %v865_v22 = vmul.f32 %v2536_v12, %v2536_v12  ;;  %v2546_v23 = vadd.f32 %v781_v18, %v2447_v61 }
 0x1f3   :  { %1744 = vtanh.f32 %v988_v44  ;;  %v990_v31 = vmul.f32 0.7978846, %v958_v52  ;;  %v896_v11 = vmul.f32 %v864_v29, %v2531_v2  ;;  %1355 = vmatprep.mubr.bf16.mxu1 %v1105_v37  ;;  %v1074_v30 = vmul.f32 %v1042_v45, %v2461_v50 }
 0x1f4   :  { %1746 = vtanh.f32 %v989_v28  ;;  %v991_v59 = vmul.f32 0.7978846, %v959_v57  ;;  %v897_v38 = vmul.f32 %v865_v22, %v2536_v12  ;;  %v866_v17 = vmul.f32 %v2546_v23, %v2546_v23 }
 0x1f5   :  { %v2553_v53 = vpop.eup %1736  ;;  %1748 = vtanh.f32 %v990_v31  ;;  %v928_v6 = vmul.f32 0.044715, %v896_v11  ;;  %v1104_v34 = vpack.c.bf16 %v1074_v30, %v1072_v58  ;;  %v2556_v40 = vadd.f32 %v783_v36, %v2450_v49 }
 0x1f6   :  { %v2558_v18 = vpop.eup %1738  ;;  %1750 = vtanh.f32 %v991_v59  ;;  %v929_v44 = vmul.f32 0.044715, %v897_v38  ;;  %v898_v28 = vmul.f32 %v866_v17, %v2546_v23  ;;  %v787_v50 = vpop.f32.mrb[20].mxu0  ;;  %v1045_v45 = vadd.f32 1.0, %v1731_v4 }
 0x1f7   :  { %v2561_v52 = vpop.eup %1740  ;;  %v960_v29 = vadd.f32 %v928_v6, %v2531_v2  ;;  %1356 = vmatmul.mubr.bf16.vlgmr.msra.gmra.mrb[0].mxu1 %v1104_v34  ;;  %v867_v37 = vmul.f32 %v2556_v40, %v2556_v40  ;;  %v2567_v58 = vadd.f32 %v787_v50, %v2447_v61  ;;  %v789_v36 = vpop.f32.mrb[21].mxu0  ;;  %v1047_v57 = vadd.f32 1.0, %v1735_v35 }
 0x1f8   :  { %v2569_v22 = vpop.eup %1742  ;;  %v961_v31 = vadd.f32 %v929_v44, %v2536_v12  ;;  %v930_v11 = vmul.f32 0.044715, %v898_v28  ;;  %v2573_v4 = vadd.f32 %v789_v36, %v2450_v49  ;;  %v1077_v30 = vmul.f32 %v1045_v45, %v2468_v26  ;;  %v791_v59 = vpop.f32.mrb[22].mxu0 }
 0x1f9   :  { %v992_v38 = vmul.f32 0.7978846, %v960_v29  ;;  %v899_v17 = vmul.f32 %v867_v37, %v2556_v40  ;;  %v868_v6 = vmul.f32 %v2567_v58, %v2567_v58  ;;  %v1079_v34 = vmul.f32 %v1047_v57, %v2470_v42  ;;  %v793_v35 = vpop.f32.mrb[23].mxu0 }
 0x1fa   :  { %v993_v50 = vmul.f32 0.7978846, %v961_v31  ;;  %v962_v25 = vadd.f32 %v930_v11, %v2546_v23  ;;  %v869_v44 = vmul.f32 %v2573_v4, %v2573_v4  ;;  %v2584_v28 = vadd.f32 %v791_v59, %v2447_v61 }
 0x1fb   :  { %1752 = vtanh.f32 %v992_v38  ;;  %v931_v26 = vmul.f32 0.044715, %v899_v17  ;;  %v900_v45 = vmul.f32 %v868_v6, %v2567_v58  ;;  %v1107_v29 = vpack.c.bf16 %v1079_v34, %v1077_v30 }
 0x1fc   :  { %1754 = vtanh.f32 %v993_v50  ;;  %v994_v37 = vmul.f32 0.7978846, %v962_v25  ;;  %v901_v36 = vmul.f32 %v869_v44, %v2573_v4  ;;  %v870_v42 = vmul.f32 %v2584_v28, %v2584_v28 }
 0x1fd   :  { %v2590_v57 = vpop.eup %1744  ;;  %v963_v31 = vadd.f32 %v931_v26, %v2556_v40  ;;  %v932_v11 = vmul.f32 0.044715, %v900_v45  ;;  %1365 = vmatprep.mubr.bf16.mxu1 %v1107_v29  ;;  %v1044_v59 = vadd.f32 1.0, %v2522_v47  ;;  %v1046_v38 = vadd.f32 1.0, %v2527_v32 }
 0x1fe   :  { %v2595_v17 = vpop.eup %1746  ;;  %1756 = vtanh.f32 %v994_v37  ;;  %v933_v30 = vmul.f32 0.044715, %v901_v36  ;;  %v902_v25 = vmul.f32 %v870_v42, %v2584_v28  ;;  %v2599_v6 = vadd.f32 %v793_v35, %v2450_v49  ;;  %v797_v34 = vpop.f32.mrb[24].mxu0 }
 0x1ff   :  { %v2601_v50 = vpop.eup %1748  ;;  %v995_v44 = vmul.f32 0.7978846, %v963_v31  ;;  %v964_v26 = vadd.f32 %v932_v11, %v2567_v58  ;;  %v1076_v45 = vmul.f32 %v1044_v59, %v2475_v13  ;;  %v1078_v47 = vmul.f32 %v1046_v38, %v2478_v46  ;;  %v799_v32 = vpop.f32.mrb[25].mxu0 }
 0x200   :  { %v2606_v29 = vpop.eup %1750  ;;  %v965_v37 = vadd.f32 %v933_v30, %v2573_v4  ;;  %v934_v36 = vmul.f32 0.044715, %v902_v25  ;;  %v871_v35 = vmul.f32 %v2599_v6, %v2599_v6  ;;  %v2612_v42 = vadd.f32 %v797_v34, %v2447_v61  ;;  %v801_v21 = vpop.f32.mrb[26].mxu0 }
 0x201   :  { %1758 = vtanh.f32 %v995_v44  ;;  %v996_v31 = vmul.f32 0.7978846, %v964_v26  ;;  %v1106_v11 = vpack.c.bf16 %v1078_v47, %v1076_v45  ;;  %v2615_v13 = vadd.f32 %v799_v32, %v2450_v49  ;;  %v803_v46 = vpop.f32.mrb[27].mxu0 }
 0x202   :  { %v997_v59 = vmul.f32 0.7978846, %v965_v37  ;;  %v966_v38 = vadd.f32 %v934_v36, %v2584_v28  ;;  %v903_v30 = vmul.f32 %v871_v35, %v2599_v6  ;;  %v872_v25 = vmul.f32 %v2612_v42, %v2612_v42 }
 0x203   :  { %1760 = vtanh.f32 %v996_v31  ;;  %1366 = vmatmul.mubr.bf16.gmra.mrb[4].mxu1 %v1106_v11  ;;  %v873_v34 = vmul.f32 %v2615_v13, %v2615_v13  ;;  %v827_v44 = vmul.f32 0.5, %v2486_v60  ;;  %v1049_v26 = vadd.f32 1.0, %v2558_v18 }
 0x204   :  { %1762 = vtanh.f32 %v997_v59  ;;  %v998_v45 = vmul.f32 0.7978846, %v966_v38  ;;  %v935_v47 = vmul.f32 0.044715, %v903_v30  ;;  %v904_v32 = vmul.f32 %v872_v25, %v2612_v42 }
 0x205   :  { %v2626_v37 = vpop.eup %1752  ;;  %v905_v36 = vmul.f32 %v873_v34, %v2615_v13  ;;  %v1051_v35 = vadd.f32 1.0, %v2569_v22  ;;  %v1081_v31 = vmul.f32 %v1049_v26, %v2494_v54  ;;  %v2632_v11 = vadd.f32 %v801_v21, %v2447_v61 }
 0x206   :  { %v2634_v16 = vpop.eup %1754  ;;  %1764 = vtanh.f32 %v998_v45  ;;  %v967_v60 = vadd.f32 %v935_v47, %v2599_v6  ;;  %v936_v18 = vmul.f32 0.044715, %v904_v32  ;;  %v824_v59 = vmul.f32 0.5, %v2473_v20  ;;  %v807_v38 = vpop.f32.mrb[28].mxu0 }
 0x207   :  { %v937_v30 = vmul.f32 0.044715, %v905_v36  ;;  %v1083_v25 = vmul.f32 %v1051_v35, %v827_v44  ;;  %v874_v34 = vmul.f32 %v2632_v11, %v2632_v11  ;;  %v826_v22 = vmul.f32 0.5, %v2483_v43  ;;  %v809_v54 = vpop.f32.mrb[29].mxu0 }
 0x208   :  { %v2641_v26 = vpop.eup %1756  ;;  %v999_v21 = vmul.f32 0.7978846, %v967_v60  ;;  %v968_v7 = vadd.f32 %v936_v18, %v2612_v42  ;;  %v1048_v45 = vadd.f32 1.0, %v2553_v53  ;;  %v1050_v47 = vadd.f32 1.0, %v2561_v52  ;;  %v811_v32 = vpop.f32.mrb[30].mxu0 }
 0x209   :  { %v969_v20 = vadd.f32 %v937_v30, %v2615_v13  ;;  %v1109_v36 = vpack.c.bf16 %v1083_v25, %v1081_v31  ;;  %v906_v44 = vmul.f32 %v874_v34, %v2632_v11  ;;  %v2649_v35 = vadd.f32 %v803_v46, %v2450_v49  ;;  %v813_v43 = vpop.f32.mrb[31].mxu0 }
 0x20a   :  { %1766 = vtanh.f32 %v999_v21  ;;  %v1000_v19 = vmul.f32 0.7978846, %v968_v7  ;;  %v1080_v63 = vmul.f32 %v1048_v45, %v824_v59  ;;  %v1082_v60 = vmul.f32 %v1050_v47, %v826_v22 }
 0x20b   :  { %v1759_v56 = vpop.eup %1758  ;;  %v1001_v18 = vmul.f32 0.7978846, %v969_v20  ;;  %1375 = vmatprep.mubr.bf16.mxu1 %v1109_v36  ;;  %v938_v53 = vmul.f32 0.044715, %v906_v44  ;;  %v875_v52 = vmul.f32 %v2649_v35, %v2649_v35  ;;  %v2654_v30 = vadd.f32 %v807_v38, %v2447_v61 }
 0x20c   :  { %1768 = vtanh.f32 %v1000_v19  ;;  %v1108_v31 = vpack.c.bf16 %v1082_v60, %v1080_v63  ;;  %v2657_v46 = vadd.f32 %v809_v54, %v2450_v49  ;;  %v829_v25 = vmul.f32 0.5, %v2502_v14 }
 0x20d   :  { %v2660_v7 = vpop.eup %1760  ;;  %1770 = vtanh.f32 %v1001_v18  ;;  %v970_v59 = vadd.f32 %v938_v53, %v2632_v11  ;;  %v907_v34 = vmul.f32 %v875_v52, %v2649_v35  ;;  %v876_v22 = vmul.f32 %v2654_v30, %v2654_v30 }
 0x20e   :  { %v1763_v21 = vpop.eup %1762  ;;  %1376 = vmatmul.mubr.bf16.gmra.mrb[8].mxu1 %v1108_v31  ;;  %v877_v63 = vmul.f32 %v2657_v46, %v2657_v46  ;;  %v831_v19 = vmul.f32 0.5, %v2514_v27  ;;  %v1053_v38 = vadd.f32 1.0, %v2595_v17  ;;  %v1055_v14 = vadd.f32 1.0, %v2606_v29 }
 0x20f   :  { %v1002_v54 = vmul.f32 0.7978846, %v970_v59  ;;  %v939_v45 = vmul.f32 0.044715, %v907_v34  ;;  %v908_v47 = vmul.f32 %v876_v22, %v2654_v30  ;;  %v2673_v20 = vadd.f32 %v811_v32, %v2447_v61 }
 0x210   :  { %v1765_v36 = vpop.eup %1764  ;;  %v909_v44 = vmul.f32 %v877_v63, %v2657_v46  ;;  %v1085_v60 = vmul.f32 %v1053_v38, %v829_v25  ;;  %v1087_v18 = vmul.f32 %v1055_v14, %v831_v19  ;;  %v828_v53 = vmul.f32 0.5, %v2499_v55 }
 0x211   :  { %1772 = vtanh.f32 %v1002_v54  ;;  %v971_v27 = vadd.f32 %v939_v45, %v2649_v35  ;;  %v940_v17 = vmul.f32 0.044715, %v908_v47  ;;  %v878_v29 = vmul.f32 %v2673_v20, %v2673_v20 }
 0x212   :  { %v941_v52 = vmul.f32 0.044715, %v909_v44  ;;  %v1111_v31 = vpack.c.bf16 %v1087_v18, %v1085_v60  ;;  %v830_v59 = vmul.f32 0.5, %v2508_v5  ;;  %v1052_v61 = vadd.f32 1.0, %v2590_v57 }
 0x213   :  { %v1003_v32 = vmul.f32 0.7978846, %v971_v27  ;;  %v972_v34 = vadd.f32 %v940_v17, %v2654_v30  ;;  %v910_v25 = vmul.f32 %v878_v29, %v2673_v20  ;;  %v1054_v55 = vadd.f32 1.0, %v2601_v50 }
 0x214   :  { %v1767_v22 = vpop.eup %1766  ;;  %v973_v63 = vadd.f32 %v941_v52, %v2657_v46  ;;  %1385 = vmatprep.mubr.bf16.mxu1 %v1111_v31  ;;  %v1084_v19 = vmul.f32 %v1052_v61, %v828_v53  ;;  %v2687_v38 = vadd.f32 %v813_v43, %v2450_v49  ;;  %v833_v14 = vmul.f32 0.5, %v2536_v12 }
 0x215   :  { %1774 = vtanh.f32 %v1003_v32  ;;  %v1004_v5 = vmul.f32 0.7978846, %v972_v34  ;;  %v942_v57 = vmul.f32 0.044715, %v910_v25  ;;  %v1086_v54 = vmul.f32 %v1054_v55, %v830_v59 }
 0x216   :  { %v1769_v45 = vpop.eup %1768  ;;  %v1005_v47 = vmul.f32 0.7978846, %v973_v63  ;;  %v879_v44 = vmul.f32 %v2687_v38, %v2687_v38  ;;  %v835_v50 = vmul.f32 0.5, %v2556_v40  ;;  %v1057_v60 = vadd.f32 1.0, %v2634_v16 }
 0x217   :  { %v1771_v18 = vpop.eup %1770  ;;  %1776 = vtanh.f32 %v1004_v5  ;;  %v974_v49 = vadd.f32 %v942_v57, %v2673_v20  ;;  %v1110_v43 = vpack.c.bf16 %v1086_v54, %v1084_v19  ;;  %v1059_v53 = vadd.f32 1.0, %v1759_v56 }
 0x218   :  { %1778 = vtanh.f32 %v1005_v47  ;;  %v911_v12 = vmul.f32 %v879_v44, %v2687_v38  ;;  %v1089_v27 = vmul.f32 %v1057_v60, %v833_v14  ;;  %v832_v52 = vmul.f32 0.5, %v2531_v2 }
 0x219   :  { %v1006_v17 = vmul.f32 0.7978846, %v974_v49  ;;  %1386 = vmatmul.mubr.bf16.gmra.mrb[12].mxu1 %v1110_v43  ;;  %v1091_v29 = vmul.f32 %v1059_v53, %v835_v50  ;;  %v1056_v31 = vadd.f32 1.0, %v2626_v37  ;;  %v834_v16 = vmul.f32 0.5, %v2546_v23 }
 0x21a   :  { %v943_v40 = vmul.f32 0.044715, %v911_v12  ;;  %v1058_v59 = vadd.f32 1.0, %v2641_v26  ;;  %v837_v61 = vmul.f32 0.5, %v2573_v4  ;;  %v839_v34 = vmul.f32 0.5, %v2599_v6 }
 0x21b   :  { %v1773_v32 = vpop.eup %1772  ;;  %1780 = vtanh.f32 %v1006_v17  ;;  %v1113_v56 = vpack.c.bf16 %v1091_v29, %v1089_v27  ;;  %v1061_v25 = vadd.f32 1.0, %v1763_v21  ;;  %v1088_v63 = vmul.f32 %v1056_v31, %v832_v52 }
 0x21c   :  { %v975_v55 = vadd.f32 %v943_v40, %v2687_v38  ;;  %v1090_v19 = vmul.f32 %v1058_v59, %v834_v16  ;;  %v1063_v2 = vadd.f32 1.0, %v1767_v22  ;;  %v836_v37 = vmul.f32 0.5, %v2567_v58 }
 0x21d   :  { %1395 = vmatprep.mubr.bf16.mxu1 %v1113_v56  ;;  %v838_v23 = vmul.f32 0.5, %v2584_v28  ;;  %v1060_v26 = vadd.f32 1.0, %v2660_v7  ;;  %v1062_v14 = vadd.f32 1.0, %v1765_v36  ;;  %v1093_v57 = vmul.f32 %v1061_v25, %v837_v61 }
 0x21e   :  { %v1007_v4 = vmul.f32 0.7978846, %v975_v55  ;;  %v1112_v5 = vpack.c.bf16 %v1090_v19, %v1088_v63  ;;  %v1095_v54 = vmul.f32 %v1063_v2, %v839_v34  ;;  %v841_v44 = vmul.f32 0.5, %v2615_v13 }
 0x21f   :  { %v1775_v47 = vpop.eup %1774  ;;  %v1092_v6 = vmul.f32 %v1060_v26, %v836_v37  ;;  %v1094_v21 = vmul.f32 %v1062_v14, %v838_v23  ;;  %v1065_v50 = vadd.f32 1.0, %v1771_v18  ;;  %v843_v60 = vmul.f32 0.5, %v2649_v35 }
 0x220   :  { %1782 = vtanh.f32 %v1007_v4  ;;  %v1115_v22 = vpack.c.bf16 %v1095_v54, %v1093_v57  ;;  %v1067_v58 = vadd.f32 1.0, %v1775_v47  ;;  %v840_v7 = vmul.f32 0.5, %v2612_v42 }
 0x221   :  { %v1777_v49 = vpop.eup %1776  ;;  %1396 = vmatmul.mubr.bf16.gmra.mrb[16].mxu1 %v1112_v5  ;;  %v1114_v28 = vpack.c.bf16 %v1094_v21, %v1092_v6  ;;  %v1064_v36 = vadd.f32 1.0, %v1769_v45  ;;  %v1097_v53 = vmul.f32 %v1065_v50, %v841_v44  ;;  %v842_v27 = vmul.f32 0.5, %v2632_v11 }
 0x222   :  { %v1779_v43 = vpop.eup %1778  ;;  %1405 = vmatprep.mubr.bf16.mxu1 %v1115_v22  ;;  %v1099_v12 = vmul.f32 %v1067_v58, %v843_v60  ;;  %v1066_v17 = vadd.f32 1.0, %v1773_v32  ;;  %v1068_v52 = vadd.f32 1.0, %v1777_v49  ;;  %v844_v40 = vmul.f32 0.5, %v2654_v30  ;;  %v109_v30 = vld [vmem:[#allocation5 + $0x3] ss:$8 sm:$0x3] }
 0x223   :  { %v1096_v18 = vmul.f32 %v1064_v36, %v840_v7  ;;  %v846_v16 = vmul.f32 0.5, %v2673_v20  ;;  %v1069_v61 = vadd.f32 1.0, %v1779_v43  ;;  %v845_v11 = vmul.f32 0.5, %v2657_v46 }
 0x224   :  { %v1117_v13 = vpack.c.bf16 %v1099_v12, %v1097_v53  ;;  %v1098_v29 = vmul.f32 %v1066_v17, %v842_v27  ;;  %v1100_v42 = vmul.f32 %v1068_v52, %v844_v40  ;;  %v847_v32 = vmul.f32 0.5, %v2687_v38  ;;  %v2844_v52 = vld [vmem:[#allocation17_spill] sm:$0xff]  ;;  %v2845_v40 = vld [vmem:[#allocation15_spill] sm:$0xff] }
 0x225   :  { %v1781_v31 = vpop.eup %1780  ;;  %v1101_v55 = vmul.f32 %v1069_v61, %v845_v11  ;;  %v2715_v20 = vrot.slane %v109_v30, %v2164_v8  ;;  %v2718_v2 = vrot.slane %v109_v30, %v2166_v10  ;;  %v2849_v30 = vld [vmem:[#allocation19_spill] sm:$0xff] }
 0x226   :  { %v1116_v35 = vpack.c.bf16 %v1098_v29, %v1096_v18  ;;  %v1070_v59 = vadd.f32 1.0, %v1781_v31 }
 0x228   :  { %v1102_v45 = vmul.f32 %v1070_v59, %v846_v16 }
 0x229   :  { %1406 = vmatmul.mubr.bf16.gmra.mrb[20].mxu1 %v1114_v28 }
 0x22a   :  { %v1783_v56 = vpop.eup %1782  ;;  %1415 = vmatprep.mubr.bf16.mxu1 %v1117_v13  ;;  %v1118_v34 = vpack.c.bf16 %v1102_v45, %v1100_v42  ;;  %v2847_v42 = vld [vmem:[#allocation16_spill] sm:$0xff] }
 0x22b   :  { %v1071_v25 = vadd.f32 1.0, %v1783_v56 }
 0x22d   :  { %v1103_v63 = vmul.f32 %v1071_v25, %v847_v32  ;;  %v2848_v25 = vld [vmem:[#allocation21_spill] sm:$0xff] }
 0x22f   :  { %v1119_v19 = vpack.c.bf16 %v1103_v63, %v1101_v55 }
 0x231   :  { %1416 = vmatmul.mubr.bf16.gmra.mrb[24].mxu1 %v1116_v35 }
 0x232   :  { %1425 = vmatprep.mubr.bf16.mxu1 %v1119_v19 }
 0x239   :  { %1426 = vmatmul.mubr.bf16.gmra.mrb[28].mxu1 %v1118_v34 }
 0x2ca   :  { %v1357_v37 = vpop.f32.mrb[0].mxu1 }
 0x2cb   :  { %v1358_v23 = vadd.f32 %v1357_v37, %v2715_v20  ;;  %v1359_v46 = vpop.f32.mrb[1].mxu1 }
 0x2cc   :  { %v1360_v38 = vadd.f32 %v1359_v46, %v2718_v2  ;;  %v1361_v26 = vpop.f32.mrb[2].mxu1  ;;  %v2850_v46 = vld [vmem:[#allocation22_spill] sm:$0xff] }
 0x2cd   :  { %v1436_v14 = vadd.f32 %v1358_v23, %v2217_v48  ;;  %v1362_v4 = vadd.f32 %v1361_v26, %v2715_v20  ;;  %v1363_v5 = vpop.f32.mrb[3].mxu1  ;;  %v2851_v26 = vld [vmem:[#allocation20_spill] sm:$0xff] }
 0x2ce   :  { %v1437_v57 = vadd.f32 %v1360_v38, %v2211_v1  ;;  %v1364_v8 = vadd.f32 %v1363_v5, %v2718_v2 }
 0x2cf   :  { %1468 = vst [vmem:[#allocation10] sm:$0xff] %v1436_v14  ;;  %v1438_v10 = vadd.f32 %v1362_v4, %v2220_v15 }
 0x2d0   :  { %1469 = vst [vmem:[#allocation10 + $0x8] sm:$0xff] %v1437_v57  ;;  %v1439_v54 = vadd.f32 %v1364_v8, %v2214_v9 }
 0x2d1   :  { %1470 = vst [vmem:[#allocation10 + $0x10] sm:$0xff] %v1438_v10 }
 0x2d2   :  { %1471 = vst [vmem:[#allocation10 + $0x18] sm:$0xff] %v1439_v54  ;;  %v2852_v54 = vld [vmem:[#allocation26_spill] sm:$0xff] }
 0x2d6   :  { %v1367_v47 = vpop.f32.mrb[4].mxu1 }
 0x2d7   :  { %v1368_v6 = vadd.f32 %v1367_v47, %v2715_v20  ;;  %v1369_v21 = vpop.f32.mrb[5].mxu1 }
 0x2d8   :  { %v1370_v48 = vadd.f32 %v1369_v21, %v2718_v2  ;;  %v1371_v44 = vpop.f32.mrb[6].mxu1 }
 0x2d9   :  { %v1440_v50 = vadd.f32 %v1368_v6, %v2247_v24  ;;  %v1372_v1 = vadd.f32 %v1371_v44, %v2715_v20  ;;  %v1373_v22 = vpop.f32.mrb[7].mxu1 }
 0x2da   :  { %v1441_v60 = vadd.f32 %v1370_v48, %v2241_v33  ;;  %v1374_v15 = vadd.f32 %v1373_v22, %v2718_v2  ;;  %v2853_v48 = vld [vmem:[#allocation23_spill] sm:$0xff] }
 0x2db   :  { %1472 = vst [vmem:[#allocation10 + $0x20] sm:$0xff] %v1440_v50  ;;  %v1442_v9 = vadd.f32 %v1372_v1, %v2250_v3  ;;  %v2854_v1 = vld [vmem:[#allocation25_spill] sm:$0xff] }
 0x2dc   :  { %1473 = vst [vmem:[#allocation10 + $0x28] sm:$0xff] %v1441_v60  ;;  %v1443_v58 = vadd.f32 %v1374_v15, %v2244_v0  ;;  %v2855_v60 = vld [vmem:[#allocation24_spill] sm:$0xff] }
 0x2dd   :  { %1474 = vst [vmem:[#allocation10 + $0x30] sm:$0xff] %v1442_v9 }
 0x2de   :  { %1475 = vst [vmem:[#allocation10 + $0x38] sm:$0xff] %v1443_v58 }
 0x2e1   :  { %v1377_v49 = vpop.f32.mrb[8].mxu1 }
 0x2e2   :  { %v1378_v28 = vadd.f32 %v1377_v49, %v2715_v20  ;;  %v1379_v7 = vpop.f32.mrb[9].mxu1 }
 0x2e3   :  { %v1380_v24 = vadd.f32 %v1379_v7, %v2718_v2  ;;  %v1381_v36 = vpop.f32.mrb[10].mxu1 }
 0x2e4   :  { %v1444_v43 = vadd.f32 %v1378_v28, %v2283_v41  ;;  %v1382_v33 = vadd.f32 %v1381_v36, %v2715_v20  ;;  %v1383_v53 = vpop.f32.mrb[11].mxu1 }
 0x2e5   :  { %v1445_v12 = vadd.f32 %v1380_v24, %v2277_v39  ;;  %v1384_v3 = vadd.f32 %v1383_v53, %v2718_v2  ;;  %v2856_v24 = vld [vmem:[#allocation30_spill] sm:$0xff]  ;;  %v2857_v53 = vld [vmem:[#allocation27_spill] sm:$0xff] }
 0x2e6   :  { %1476 = vst [vmem:[#allocation10 + $0x40] sm:$0xff] %v1444_v43  ;;  %v1446_v0 = vadd.f32 %v1382_v33, %v2286_v62 }
 0x2e7   :  { %1477 = vst [vmem:[#allocation10 + $0x48] sm:$0xff] %v1445_v12  ;;  %v1447_v27 = vadd.f32 %v1384_v3, %v2280_v51  ;;  %v2846_v51 = vld [vmem:[#allocation18_spill] sm:$0xff] }
 0x2e8   :  { %1478 = vst [vmem:[#allocation10 + $0x50] sm:$0xff] %v1446_v0  ;;  %v2858_v0 = vld [vmem:[#allocation29_spill] sm:$0xff] }
 0x2e9   :  { %1479 = vst [vmem:[#allocation10 + $0x58] sm:$0xff] %v1447_v27 }
 0x2ec   :  { %v1387_v17 = vpop.f32.mrb[12].mxu1 }
 0x2ed   :  { %v1388_v13 = vadd.f32 %v1387_v17, %v2715_v20  ;;  %v1389_v18 = vpop.f32.mrb[13].mxu1  ;;  %v2859_v17 = vld [vmem:[#allocation28_spill] sm:$0xff] }
 0x2ee   :  { %v1390_v41 = vadd.f32 %v1389_v18, %v2718_v2  ;;  %v1391_v29 = vpop.f32.mrb[14].mxu1 }
 0x2ef   :  { %v1448_v31 = vadd.f32 %v1388_v13, %v2844_v52  ;;  %v1392_v39 = vadd.f32 %v1391_v29, %v2715_v20  ;;  %v1393_v35 = vpop.f32.mrb[15].mxu1 }
 0x2f0   :  { %v1449_v16 = vadd.f32 %v1390_v41, %v2845_v40  ;;  %v1394_v62 = vadd.f32 %v1393_v35, %v2718_v2 }
 0x2f1   :  { %1480 = vst [vmem:[#allocation10 + $0x60] sm:$0xff] %v1448_v31  ;;  %v1450_v59 = vadd.f32 %v1392_v39, %v2846_v51  ;;  %v2860_v39 = vld [vmem:[#allocation34_spill] sm:$0xff] }
 0x2f2   :  { %1481 = vst [vmem:[#allocation10 + $0x68] sm:$0xff] %v1449_v16  ;;  %v1451_v45 = vadd.f32 %v1394_v62, %v2847_v42  ;;  %v2861_v62 = vld [vmem:[#allocation31_spill] sm:$0xff]  ;;  %v2862_v42 = vld [vmem:[#allocation33_spill] sm:$0xff] }
 0x2f3   :  { %1482 = vst [vmem:[#allocation10 + $0x70] sm:$0xff] %v1450_v59 }
 0x2f4   :  { %1483 = vst [vmem:[#allocation10 + $0x78] sm:$0xff] %v1451_v45  ;;  %v1397_v61 = vpop.f32.mrb[16].mxu1 }
 0x2f5   :  { %v1398_v56 = vadd.f32 %v1397_v61, %v2715_v20  ;;  %v1399_v34 = vpop.f32.mrb[17].mxu1  ;;  %v2863_v61 = vld [vmem:[#allocation32_spill] sm:$0xff] }
 0x2f6   :  { %v1400_v11 = vadd.f32 %v1399_v34, %v2718_v2  ;;  %v1401_v32 = vpop.f32.mrb[18].mxu1 }
 0x2f7   :  { %v1452_v55 = vadd.f32 %v1398_v56, %v2848_v25  ;;  %v1402_v63 = vadd.f32 %v1401_v32, %v2715_v20  ;;  %v1403_v19 = vpop.f32.mrb[19].mxu1 }
 0x2f8   :  { %v1453_v37 = vadd.f32 %v1400_v11, %v2849_v30  ;;  %v1404_v23 = vadd.f32 %v1403_v19, %v2718_v2 }
 0x2f9   :  { %1484 = vst [vmem:[#allocation10 + $0x80] sm:$0xff] %v1452_v55  ;;  %v1454_v38 = vadd.f32 %v1402_v63, %v2850_v46 }
 0x2fa   :  { %1485 = vst [vmem:[#allocation10 + $0x88] sm:$0xff] %v1453_v37  ;;  %v1455_v14 = vadd.f32 %v1404_v23, %v2851_v26 }
 0x2fb   :  { %1486 = vst [vmem:[#allocation10 + $0x90] sm:$0xff] %v1454_v38 }
 0x2fc   :  { %1487 = vst [vmem:[#allocation10 + $0x98] sm:$0xff] %v1455_v14  ;;  %v1407_v4 = vpop.f32.mrb[20].mxu1 }
 0x2fd   :  { %v1408_v5 = vadd.f32 %v1407_v4, %v2715_v20  ;;  %v1409_v57 = vpop.f32.mrb[21].mxu1 }
 0x2fe   :  { %v1410_v8 = vadd.f32 %v1409_v57, %v2718_v2  ;;  %v1411_v10 = vpop.f32.mrb[22].mxu1 }
 0x2ff   :  { %v1456_v47 = vadd.f32 %v1408_v5, %v2852_v54  ;;  %v1412_v6 = vadd.f32 %v1411_v10, %v2715_v20  ;;  %v1413_v21 = vpop.f32.mrb[23].mxu1 }
 0x300   :  { %v1457_v44 = vadd.f32 %v1410_v8, %v2853_v48  ;;  %v1414_v50 = vadd.f32 %v1413_v21, %v2718_v2 }
 0x301   :  { %1488 = vst [vmem:[#allocation10 + $0xa0] sm:$0xff] %v1456_v47  ;;  %v1458_v22 = vadd.f32 %v1412_v6, %v2854_v1 }
 0x302   :  { %1489 = vst [vmem:[#allocation10 + $0xa8] sm:$0xff] %v1457_v44  ;;  %v1459_v15 = vadd.f32 %v1414_v50, %v2855_v60 }
 0x303   :  { %1490 = vst [vmem:[#allocation10 + $0xb0] sm:$0xff] %v1458_v22 }
 0x304   :  { %1491 = vst [vmem:[#allocation10 + $0xb8] sm:$0xff] %v1459_v15  ;;  %v1417_v9 = vpop.f32.mrb[24].mxu1 }
 0x305   :  { %v1418_v58 = vadd.f32 %v1417_v9, %v2715_v20  ;;  %v1419_v49 = vpop.f32.mrb[25].mxu1 }
 0x306   :  { %v1420_v28 = vadd.f32 %v1419_v49, %v2718_v2  ;;  %v1421_v7 = vpop.f32.mrb[26].mxu1 }
 0x307   :  { %v1460_v36 = vadd.f32 %v1418_v58, %v2856_v24  ;;  %v1422_v43 = vadd.f32 %v1421_v7, %v2715_v20  ;;  %v1423_v33 = vpop.f32.mrb[27].mxu1 }
 0x308   :  { %v1461_v12 = vadd.f32 %v1420_v28, %v2857_v53  ;;  %v1424_v3 = vadd.f32 %v1423_v33, %v2718_v2 }
 0x309   :  { %1492 = vst [vmem:[#allocation10 + $0xc0] sm:$0xff] %v1460_v36  ;;  %v1462_v27 = vadd.f32 %v1422_v43, %v2858_v0 }
 0x30a   :  { %1493 = vst [vmem:[#allocation10 + $0xc8] sm:$0xff] %v1461_v12  ;;  %v1463_v13 = vadd.f32 %v1424_v3, %v2859_v17 }
 0x30b   :  { %1494 = vst [vmem:[#allocation10 + $0xd0] sm:$0xff] %v1462_v27 }
 0x30c   :  { %1495 = vst [vmem:[#allocation10 + $0xd8] sm:$0xff] %v1463_v13  ;;  %v1427_v18 = vpop.f32.mrb[28].mxu1 }
 0x30d   :  { %v1428_v41 = vadd.f32 %v1427_v18, %v2715_v20  ;;  %v1429_v29 = vpop.f32.mrb[29].mxu1 }
 0x30e   :  { %v1430_v52 = vadd.f32 %v1429_v29, %v2718_v2  ;;  %v1431_v31 = vpop.f32.mrb[30].mxu1 }
 0x30f   :  { %v1464_v35 = vadd.f32 %v1428_v41, %v2860_v39  ;;  %v1432_v40 = vadd.f32 %v1431_v31, %v2715_v20  ;;  %v1433_v16 = vpop.f32.mrb[31].mxu1 }
 0x310   :  { %v1465_v51 = vadd.f32 %v1430_v52, %v2861_v62  ;;  %v1434_v59 = vadd.f32 %v1433_v16, %v2718_v2 }
 0x311   :  { %1496 = vst [vmem:[#allocation10 + $0xe0] sm:$0xff] %v1464_v35  ;;  %v1466_v45 = vadd.f32 %v1432_v40, %v2862_v42 }
 0x312   :  { %1497 = vst [vmem:[#allocation10 + $0xe8] sm:$0xff] %v1465_v51  ;;  %v1467_v56 = vadd.f32 %v1434_v59, %v2863_v61 }
 0x313   :  { %1498 = vst [vmem:[#allocation10 + $0xf0] sm:$0xff] %v1466_v45 }
 0x314   :  { %1499 = vst [vmem:[#allocation10 + $0xf8] sm:$0xff] %v1467_v56 }
 0x315   :  { %1883 = shalt.err (!%p1880_p8)
}
 0x316   :  { %s1884_s17 = scalar_lea.hbm %s2803_s4, 4096 }
 0x317   :  { %p1885_p9 = scmp.ne.s32.totalorder %s2803_s4, %s1884_s17  ;;  %p1888_p10 = scmp.lt.u32.totalorder %s1884_s17, %s2803_s4 }
 0x319   :  { %p1890_p11 = pnand %p1888_p10, %p1885_p9 }
 0x31b   :  { %1893 = shalt.err (!%p1890_p11)
}
 0x31c   :  { %1511 = dma.vmem_to_hbm [thread:$0]  %s1506_s13, 4096, %s2803_s4, [#allocation4], %s1904_s1, %s1904_s1, %s1905_s11  }
 0x31d   :  { %1900 = dma.done.wait [#allocation4], 4096  }
 0x31e   :  { %1901 = vsyncadd [#allocation4], 4294963200 }
 0x31f   :  { %1515 = vsyncpa [#allocation3], 1 }
 0x320   :  { %1516 = vsyncpa [#allocation6], 1 }
 0x321   :  { %1517 = vsyncpa [#allocation9], 1 }
 0x322   :  { %1518 = vsyncpa [#allocation4], 1 }

</bundles_post_ra>
